<compile_context>
chip_gen: v5e
topology: v5e:2x2
jax: 0.10.0
libtpu: 0.0.40
codegen_flags: <defaults>
</compile_context>

<pallas_src>
import numpy as np
import jax
import jax.numpy as jnp
from jax.experimental import pallas as pl
from jax.experimental.pallas import tpu as pltpu


# ---------------------------------------------------------------------------
# Dimensions (hidden widths zero-padded to lane multiples of 128; the input /
# output feature dim 784 is kept exact since full-dim blocks are legal).
# ---------------------------------------------------------------------------
D_IN = 28 * 28            # 784
D_H1, P_H1 = 14 * 14, 256  # 196 -> 256
D_H2, P_H2 = 8 * 8, 128    # 64  -> 128
D_OUT = 28 * 28           # 784

TILE_B_MAX = 512          # batch-tile rows per grid step (v5e-safe w/o flags)
SPLIT_MIN_B = 128         # force >= 2 grid steps above this batch (megacore)


def _round_up(n, m):
    return ((n + m - 1) // m) * m


# ---------------------------------------------------------------------------
# Lower 1-channel Conv2d / ConvTranspose2d to dense matrices (exact PyTorch
# semantics). Done once in numpy at parameter-setup time.
# ---------------------------------------------------------------------------
def conv2d_dense(w, H, W, k, s, p):
    """Dense M s.t. flatten(conv2d(x)) = flatten(x) @ M  (1 in / 1 out channel)."""
    OH = (H + 2 * p - k) // s + 1
    OW = (W + 2 * p - k) // s + 1
    M = np.zeros((H * W, OH * OW), dtype=np.float32)
    for oy in range(OH):
        for ox in range(OW):
            for ky in range(k):
                for kx in range(k):
                    iy = oy * s + ky - p
                    ix = ox * s + kx - p
                    if 0 <= iy < H and 0 <= ix < W:
                        M[iy * W + ix, oy * OW + ox] += w[ky, kx]
    return M, OH, OW


def convT2d_dense(w, H, W, k, s, p):
    """Dense M s.t. flatten(conv_transpose2d(x)) = flatten(x) @ M."""
    OH = (H - 1) * s - 2 * p + k
    OW = (W - 1) * s - 2 * p + k
    M = np.zeros((H * W, OH * OW), dtype=np.float32)
    for iy in range(H):
        for ix in range(W):
            for ky in range(k):
                for kx in range(k):
                    oy = iy * s + ky - p
                    ox = ix * s + kx - p
                    if 0 <= oy < OH and 0 <= ox < OW:
                        M[iy * W + ix, oy * OW + ox] += w[ky, kx]
    return M, OH, OW


def _pad2(a, rows, cols):
    return np.pad(a, ((0, rows - a.shape[0]), (0, cols - a.shape[1])))


# ---------------------------------------------------------------------------
# Pallas kernel: full encoder + decoder forward for one batch tile.
# ---------------------------------------------------------------------------
def autoencoder_kernel(x_ref,
                       w1_ref, b1_ref,   # conv1   784 -> 256 (196 padded)
                       w2_ref, b2_ref,   # conv2   256 -> 128 (64 padded)
                       w3_ref, b3_ref,   # linear  128 -> 128
                       w4_ref, b4_ref,   # linear  128 -> 128
                       w5_ref, b5_ref,   # convT1  128 -> 256
                       w6_ref, b6_ref,   # convT2  256 -> 784
                       o_ref):
    def layer(h, w_ref, b_ref, relu=True):
        y = jnp.dot(h.astype(jnp.bfloat16), w_ref[...],
                    preferred_element_type=jnp.float32) + b_ref[...]
        return jnp.maximum(y, 0.0) if relu else y

    h = x_ref[...]                                   # (tile_b, 784) bf16
    h = layer(h, w1_ref, b1_ref)
    h = layer(h, w2_ref, b2_ref)
    h = layer(h, w3_ref, b3_ref)
    h = layer(h, w4_ref, b4_ref)
    h = layer(h, w5_ref, b5_ref)
    h = layer(h, w6_ref, b6_ref, relu=False)
    # Exact sigmoid with a single EUP op: sigmoid(h) = 0.5*(1 + tanh(0.5*h)).
    o_ref[...] = 0.5 * (1.0 + jnp.tanh(0.5 * h))


def autoencoder_forward(x_nchw, params):
    """x_nchw: (B, 1, 28, 28) float32 -> (B, 1, 28, 28) float32."""
    B = x_nchw.shape[0]
    # bf16 input (kernel casts to bf16 at the first dot anyway) -> half the
    # streamed input bytes; no feature padding.
    x_flat = jnp.asarray(x_nchw, jnp.float32).reshape(B, D_IN).astype(jnp.bfloat16)

    # Adaptive batch tiling: bound ragged-batch padding to <= 15 rows and keep
    # >= 2 grid steps for medium/large batches so both TensorCores get work.
    n_tiles = max(1, (B + TILE_B_MAX - 1) // TILE_B_MAX)
    if n_tiles == 1 and B >= SPLIT_MIN_B:
        n_tiles = 2
    tile_b = _round_up((B + n_tiles - 1) // n_tiles, 16)   # 16: bf16 sublanes
    Bp = _round_up(B, tile_b)
    if Bp != B:
        x_flat = jnp.pad(x_flat, ((0, Bp - B), (0, 0)))

    flat_params = [p for wb in params for p in wb]

    # x streams per grid step; every weight/bias block index is constant so the
    # ~1 MiB of bf16 weights is DMA'd once and stays resident in VMEM.
    # TODO(synk): pipeline_mode=pl.Buffered(1) on the weight specs would drop
    # their second (unused) buffer; skipped here since headroom is ample.
    in_specs = [pl.BlockSpec((tile_b, D_IN), lambda i: (i, 0))]
    for p in flat_params:
        in_specs.append(pl.BlockSpec(p.shape, lambda i: (0, 0)))

    flops_per_row = 2 * (D_IN * P_H1 + P_H1 * P_H2 + 2 * P_H2 * P_H2
                         + P_H2 * P_H1 + P_H1 * D_OUT)
    w_bytes = sum(int(np.prod(p.shape)) * p.dtype.itemsize for p in flat_params)
    cost = pl.CostEstimate(
        flops=Bp * flops_per_row,
        transcendentals=Bp * D_OUT,
        bytes_accessed=Bp * D_IN * 2 + Bp * D_OUT * 4 + w_bytes)

    out_flat = pl.pallas_call(
        autoencoder_kernel,
        out_shape=jax.ShapeDtypeStruct((Bp, D_OUT), jnp.float32),
        grid=(Bp // tile_b,),
        in_specs=in_specs,
        out_specs=pl.BlockSpec((tile_b, D_OUT), lambda i: (i, 0)),
        compiler_params=pltpu.CompilerParams(
            dimension_semantics=("parallel",)),
        cost_estimate=cost,
    )(x_flat, *flat_params)

    out = out_flat if Bp == B else out_flat[:B]
    return out.reshape(B, 1, 28, 28)


# ---------------------------------------------------------------------------
# Parameter construction (synthetic, deterministic) and references.
# ---------------------------------------------------------------------------
def build_params(key):
    """Synthetic parameters matching the PyTorch module shapes, lowered to
    (padded) dense matrices: bf16 weights, f32 biases."""
    ks = jax.random.split(key, 12)

    def rnd(k, shape, scale):
        return np.asarray(jax.random.normal(k, shape, jnp.float32)) * scale

    # encoder conv1: Conv2d(1,1,k=4,s=2,p=1); conv2: Conv2d(1,1,k=2,s=2,p=1)
    w_c1, b_c1 = rnd(ks[0], (4, 4), 0.25), rnd(ks[1], (1,), 0.1)
    w_c2, b_c2 = rnd(ks[2], (2, 2), 0.5), rnd(ks[3], (1,), 0.1)
    # encoder / decoder Linear(64,64): y = x @ W.T + b
    w_l1, b_l1 = rnd(ks[4], (64, 64), 0.125), rnd(ks[5], (64,), 0.1)
    w_l2, b_l2 = rnd(ks[6], (64, 64), 0.125), rnd(ks[7], (64,), 0.1)
    # decoder convT1: ConvTranspose2d(1,1,k=2,s=2,p=1); convT2: (k=4,s=2,p=1)
    w_t1, b_t1 = rnd(ks[8], (2, 2), 0.5), rnd(ks[9], (1,), 0.1)
    w_t2, b_t2 = rnd(ks[10], (4, 4), 0.25), rnd(ks[11], (1,), 0.1)

    M1, oh1, ow1 = conv2d_dense(w_c1, 28, 28, k=4, s=2, p=1)   # 28x28 -> 14x14
    assert (oh1, ow1) == (14, 14)
    M2, oh2, ow2 = conv2d_dense(w_c2, 14, 14, k=2, s=2, p=1)   # 14x14 -> 8x8
    assert (oh2, ow2) == (8, 8)
    M5, oh5, ow5 = convT2d_dense(w_t1, 8, 8, k=2, s=2, p=1)    # 8x8  -> 14x14
    assert (oh5, ow5) == (14, 14)
    M6, oh6, ow6 = convT2d_dense(w_t2, 14, 14, k=4, s=2, p=1)  # 14x14 -> 28x28
    assert (oh6, ow6) == (28, 28)

    def wdev(a, rows, cols):                 # padded bf16 weight matrix
        return jnp.asarray(_pad2(np.asarray(a, np.float32), rows, cols),
                           jnp.bfloat16)

    def bdev(a, cols):                       # padded f32 (1, cols) bias row
        return jnp.asarray(_pad2(np.asarray(a, np.float32).reshape(1, -1),
                                 1, cols), jnp.float32)

    params = [
        (wdev(M1, D_IN, P_H1),     bdev(np.full((D_H1,), b_c1[0]), P_H1)),
        (wdev(M2, P_H1, P_H2),     bdev(np.full((D_H2,), b_c2[0]), P_H2)),
        (wdev(w_l1.T, P_H2, P_H2), bdev(b_l1, P_H2)),
        (wdev(w_l2.T, P_H2, P_H2), bdev(b_l2, P_H2)),
        (wdev(M5, P_H2, P_H1),     bdev(np.full((D_H1,), b_t1[0]), P_H1)),
        (wdev(M6, P_H1, D_OUT),    bdev(np.full((D_OUT,), b_t2[0]), D_OUT)),
    ]
    raw = dict(w_c1=w_c1, w_c2=w_c2, w_t1=w_t1, w_t2=w_t2)
    return params, raw


def reference_forward(x_nchw, params):
    """Plain-JAX reference mirroring the kernel math (bf16 dots, f32 accum,
    exact sigmoid)."""
    B = x_nchw.shape[0]
    h = jnp.asarray(x_nchw, jnp.float32).reshape(B, D_IN).astype(jnp.bfloat16)
    for i, (w, b) in enumerate(params):
        y = jnp.dot(h.astype(jnp.bfloat16), w,
                    preferred_element_type=jnp.float32) + b
        h = jnp.maximum(y, 0.0) if i < len(params) - 1 else y
    return jax.nn.sigmoid(h).reshape(B, 1, 28, 28)


def check_dense_lowering(raw):
    """Independent validation of the dense conv/convT lowering against
    lax.conv_general_dilated (PyTorch Conv2d / ConvTranspose2d semantics)."""
    dn = ("NCHW", "OIHW", "NCHW")

    def check_conv(w, H, k, s, p):
        x = jax.random.normal(jax.random.PRNGKey(123 + H), (2, 1, H, H),
                              jnp.float32)
        M, oh, ow = conv2d_dense(w, H, H, k, s, p)
        y_dense = (x.reshape(2, -1) @ jnp.asarray(M)).reshape(2, 1, oh, ow)
        y_lax = jax.lax.conv_general_dilated(
            x, jnp.asarray(w).reshape(1, 1, k, k), window_strides=(s, s),
            padding=[(p, p), (p, p)], dimension_numbers=dn)
        np.testing.assert_allclose(np.asarray(y_dense), np.asarray(y_lax),
                                   rtol=1e-4, atol=1e-4)

    def check_convT(w, H, k, s, p):
        x = jax.random.normal(jax.random.PRNGKey(321 + H), (2, 1, H, H),
                              jnp.float32)
        M, oh, ow = convT2d_dense(w, H, H, k, s, p)
        y_dense = (x.reshape(2, -1) @ jnp.asarray(M)).reshape(2, 1, oh, ow)
        w_flip = jnp.asarray(np.asarray(w)[::-1, ::-1].copy()).reshape(1, 1, k, k)
        pad = k - 1 - p
        y_lax = jax.lax.conv_general_dilated(
            x, w_flip, window_strides=(1, 1), padding=[(pad, pad), (pad, pad)],
            lhs_dilation=(s, s), dimension_numbers=dn)
        np.testing.assert_allclose(np.asarray(y_dense), np.asarray(y_lax),
                                   rtol=1e-4, atol=1e-4)

    check_conv(raw["w_c1"], 28, 4, 2, 1)
    check_conv(raw["w_c2"], 14, 2, 2, 1)
    check_convT(raw["w_t1"], 8, 2, 2, 1)
    check_convT(raw["w_t2"], 14, 4, 2, 1)


if __name__ == "__main__":
    key = jax.random.PRNGKey(0)
    k_param, k_x1, k_x2 = jax.random.split(key, 3)

    params, raw = build_params(k_param)

    # One-off independent check of the conv -> dense lowering vs lax convs.
    check_dense_lowering(raw)

    # Main check: small batch, as implied by the module (NCHW 1x28x28 inputs).
    B = 4
    x = jax.random.uniform(k_x1, (B, 1, 28, 28), jnp.float32)
    out = jax.block_until_ready(autoencoder_forward(x, params))
    ref = reference_forward(x, params)
    assert out.shape == (B, 1, 28, 28)
    assert bool(jnp.all(jnp.isfinite(out)))
    np.testing.assert_allclose(np.asarray(out), np.asarray(ref),
                               rtol=1e-2, atol=1e-2)

    # Larger / ragged batch check (exercises the multi-tile grid, megacore
    # split and batch-padding path).
    B2 = 160
    x2 = jax.random.uniform(k_x2, (B2, 1, 28, 28), jnp.float32)
    out2 = jax.block_until_ready(autoencoder_forward(x2, params))
    ref2 = reference_forward(x2, params)
    assert out2.shape == (B2, 1, 28, 28)
    np.testing.assert_allclose(np.asarray(out2), np.asarray(ref2),
                               rtol=1e-2, atol=1e-2)

    print("KERNEL_OK")
</pallas_src>

<mosaic_0001>
module attributes {stable_mosaic.version = 11 : i64} {
  func.func @autoencoder_kernel(%arg0: i32, %arg1: memref<16x784xbf16, #tpu.memory_space<vmem>>, %arg2: memref<784x256xbf16, #tpu.memory_space<vmem>>, %arg3: memref<1x256xf32, #tpu.memory_space<vmem>>, %arg4: memref<256x128xbf16, #tpu.memory_space<vmem>>, %arg5: memref<1x128xf32, #tpu.memory_space<vmem>>, %arg6: memref<128x128xbf16, #tpu.memory_space<vmem>>, %arg7: memref<1x128xf32, #tpu.memory_space<vmem>>, %arg8: memref<128x128xbf16, #tpu.memory_space<vmem>>, %arg9: memref<1x128xf32, #tpu.memory_space<vmem>>, %arg10: memref<128x256xbf16, #tpu.memory_space<vmem>>, %arg11: memref<1x256xf32, #tpu.memory_space<vmem>>, %arg12: memref<256x784xbf16, #tpu.memory_space<vmem>>, %arg13: memref<1x784xf32, #tpu.memory_space<vmem>>, %arg14: memref<16x784xf32, #tpu.memory_space<vmem>>) attributes {dimension_semantics = [#tpu.dimension_semantics<parallel>], iteration_bounds = array<i64: 1>, scalar_prefetch = 0 : i64, scratch_operands = 0 : i64, tpu.core_type = #tpu.core_type<tc>, window_params = [{transform_indices = @transform_0, window_bounds = array<i64: 16, 784>}, {pipeline_mode = #tpu.pipeline_mode<synchronous>, transform_indices = @transform_1, window_bounds = array<i64: 784, 256>}, {pipeline_mode = #tpu.pipeline_mode<synchronous>, transform_indices = @transform_2, window_bounds = array<i64: 1, 256>}, {pipeline_mode = #tpu.pipeline_mode<synchronous>, transform_indices = @transform_3, window_bounds = array<i64: 256, 128>}, {pipeline_mode = #tpu.pipeline_mode<synchronous>, transform_indices = @transform_4, window_bounds = array<i64: 1, 128>}, {pipeline_mode = #tpu.pipeline_mode<synchronous>, transform_indices = @transform_5, window_bounds = array<i64: 128, 128>}, {pipeline_mode = #tpu.pipeline_mode<synchronous>, transform_indices = @transform_6, window_bounds = array<i64: 1, 128>}, {pipeline_mode = #tpu.pipeline_mode<synchronous>, transform_indices = @transform_7, window_bounds = array<i64: 128, 128>}, {pipeline_mode = #tpu.pipeline_mode<synchronous>, transform_indices = @transform_8, window_bounds = array<i64: 1, 128>}, {pipeline_mode = #tpu.pipeline_mode<synchronous>, transform_indices = @transform_9, window_bounds = array<i64: 128, 256>}, {pipeline_mode = #tpu.pipeline_mode<synchronous>, transform_indices = @transform_10, window_bounds = array<i64: 1, 256>}, {pipeline_mode = #tpu.pipeline_mode<synchronous>, transform_indices = @transform_11, window_bounds = array<i64: 256, 784>}, {pipeline_mode = #tpu.pipeline_mode<synchronous>, transform_indices = @transform_12, window_bounds = array<i64: 1, 784>}, {transform_indices = @transform_13, window_bounds = array<i64: 16, 784>}]} {
    %c0 = arith.constant 0 : index
    %c0_0 = arith.constant 0 : index
    %0 = vector.load %arg1[%c0, %c0_0] : memref<16x784xbf16, #tpu.memory_space<vmem>>, vector<16x784xbf16>
    %c0_1 = arith.constant 0 : index
    %c0_2 = arith.constant 0 : index
    %1 = vector.load %arg2[%c0_1, %c0_2] : memref<784x256xbf16, #tpu.memory_space<vmem>>, vector<784x256xbf16>
    %cst = arith.constant dense<0.000000e+00> : vector<16x256xf32>
    %2 = tpu.matmul %0, %1, %cst {dimension_numbers = #tpu.dot_dimension_numbers<[1], [0], [0], [1], [0, 0, 1, 1], [], []>} : vector<16x784xbf16>, vector<784x256xbf16>, vector<16x256xf32> -> vector<16x256xf32>
    %c0_3 = arith.constant 0 : index
    %c0_4 = arith.constant 0 : index
    %3 = vector.load %arg3[%c0_3, %c0_4] : memref<1x256xf32, #tpu.memory_space<vmem>>, vector<1x256xf32>
    %4 = vector.broadcast %3 : vector<1x256xf32> to vector<16x256xf32>
    %5 = arith.addf %2, %4 : vector<16x256xf32>
    %cst_5 = arith.constant 0.000000e+00 : f32
    %6 = vector.broadcast %cst_5 : f32 to vector<16x256xf32>
    %7 = arith.maximumf %5, %6 : vector<16x256xf32>
    %8 = arith.truncf %7 : vector<16x256xf32> to vector<16x256xbf16>
    %c0_6 = arith.constant 0 : index
    %c0_7 = arith.constant 0 : index
    %9 = vector.load %arg4[%c0_6, %c0_7] : memref<256x128xbf16, #tpu.memory_space<vmem>>, vector<256x128xbf16>
    %cst_8 = arith.constant dense<0.000000e+00> : vector<16x128xf32>
    %10 = tpu.matmul %8, %9, %cst_8 {dimension_numbers = #tpu.dot_dimension_numbers<[1], [0], [0], [1], [0, 0, 1, 1], [], []>} : vector<16x256xbf16>, vector<256x128xbf16>, vector<16x128xf32> -> vector<16x128xf32>
    %c0_9 = arith.constant 0 : index
    %c0_10 = arith.constant 0 : index
    %11 = vector.load %arg5[%c0_9, %c0_10] : memref<1x128xf32, #tpu.memory_space<vmem>>, vector<1x128xf32>
    %12 = vector.broadcast %11 : vector<1x128xf32> to vector<16x128xf32>
    %13 = arith.addf %10, %12 : vector<16x128xf32>
    %cst_11 = arith.constant 0.000000e+00 : f32
    %14 = vector.broadcast %cst_11 : f32 to vector<16x128xf32>
    %15 = arith.maximumf %13, %14 : vector<16x128xf32>
    %16 = arith.truncf %15 : vector<16x128xf32> to vector<16x128xbf16>
    %c0_12 = arith.constant 0 : index
    %c0_13 = arith.constant 0 : index
    %17 = vector.load %arg6[%c0_12, %c0_13] : memref<128x128xbf16, #tpu.memory_space<vmem>>, vector<128x128xbf16>
    %cst_14 = arith.constant dense<0.000000e+00> : vector<16x128xf32>
    %18 = tpu.matmul %16, %17, %cst_14 {dimension_numbers = #tpu.dot_dimension_numbers<[1], [0], [0], [1], [0, 0, 1, 1], [], []>} : vector<16x128xbf16>, vector<128x128xbf16>, vector<16x128xf32> -> vector<16x128xf32>
    %c0_15 = arith.constant 0 : index
    %c0_16 = arith.constant 0 : index
    %19 = vector.load %arg7[%c0_15, %c0_16] : memref<1x128xf32, #tpu.memory_space<vmem>>, vector<1x128xf32>
    %20 = vector.broadcast %19 : vector<1x128xf32> to vector<16x128xf32>
    %21 = arith.addf %18, %20 : vector<16x128xf32>
    %cst_17 = arith.constant 0.000000e+00 : f32
    %22 = vector.broadcast %cst_17 : f32 to vector<16x128xf32>
    %23 = arith.maximumf %21, %22 : vector<16x128xf32>
    %24 = arith.truncf %23 : vector<16x128xf32> to vector<16x128xbf16>
    %c0_18 = arith.constant 0 : index
    %c0_19 = arith.constant 0 : index
    %25 = vector.load %arg8[%c0_18, %c0_19] : memref<128x128xbf16, #tpu.memory_space<vmem>>, vector<128x128xbf16>
    %cst_20 = arith.constant dense<0.000000e+00> : vector<16x128xf32>
    %26 = tpu.matmul %24, %25, %cst_20 {dimension_numbers = #tpu.dot_dimension_numbers<[1], [0], [0], [1], [0, 0, 1, 1], [], []>} : vector<16x128xbf16>, vector<128x128xbf16>, vector<16x128xf32> -> vector<16x128xf32>
    %c0_21 = arith.constant 0 : index
    %c0_22 = arith.constant 0 : index
    %27 = vector.load %arg9[%c0_21, %c0_22] : memref<1x128xf32, #tpu.memory_space<vmem>>, vector<1x128xf32>
    %28 = vector.broadcast %27 : vector<1x128xf32> to vector<16x128xf32>
    %29 = arith.addf %26, %28 : vector<16x128xf32>
    %cst_23 = arith.constant 0.000000e+00 : f32
    %30 = vector.broadcast %cst_23 : f32 to vector<16x128xf32>
    %31 = arith.maximumf %29, %30 : vector<16x128xf32>
    %32 = arith.truncf %31 : vector<16x128xf32> to vector<16x128xbf16>
    %c0_24 = arith.constant 0 : index
    %c0_25 = arith.constant 0 : index
    %33 = vector.load %arg10[%c0_24, %c0_25] : memref<128x256xbf16, #tpu.memory_space<vmem>>, vector<128x256xbf16>
    %cst_26 = arith.constant dense<0.000000e+00> : vector<16x256xf32>
    %34 = tpu.matmul %32, %33, %cst_26 {dimension_numbers = #tpu.dot_dimension_numbers<[1], [0], [0], [1], [0, 0, 1, 1], [], []>} : vector<16x128xbf16>, vector<128x256xbf16>, vector<16x256xf32> -> vector<16x256xf32>
    %c0_27 = arith.constant 0 : index
    %c0_28 = arith.constant 0 : index
    %35 = vector.load %arg11[%c0_27, %c0_28] : memref<1x256xf32, #tpu.memory_space<vmem>>, vector<1x256xf32>
    %36 = vector.broadcast %35 : vector<1x256xf32> to vector<16x256xf32>
    %37 = arith.addf %34, %36 : vector<16x256xf32>
    %cst_29 = arith.constant 0.000000e+00 : f32
    %38 = vector.broadcast %cst_29 : f32 to vector<16x256xf32>
    %39 = arith.maximumf %37, %38 : vector<16x256xf32>
    %40 = arith.truncf %39 : vector<16x256xf32> to vector<16x256xbf16>
    %c0_30 = arith.constant 0 : index
    %c0_31 = arith.constant 0 : index
    %41 = vector.load %arg12[%c0_30, %c0_31] : memref<256x784xbf16, #tpu.memory_space<vmem>>, vector<256x784xbf16>
    %cst_32 = arith.constant dense<0.000000e+00> : vector<16x784xf32>
    %42 = tpu.matmul %40, %41, %cst_32 {dimension_numbers = #tpu.dot_dimension_numbers<[1], [0], [0], [1], [0, 0, 1, 1], [], []>} : vector<16x256xbf16>, vector<256x784xbf16>, vector<16x784xf32> -> vector<16x784xf32>
    %c0_33 = arith.constant 0 : index
    %c0_34 = arith.constant 0 : index
    %43 = vector.load %arg13[%c0_33, %c0_34] : memref<1x784xf32, #tpu.memory_space<vmem>>, vector<1x784xf32>
    %44 = vector.broadcast %43 : vector<1x784xf32> to vector<16x784xf32>
    %45 = arith.addf %42, %44 : vector<16x784xf32>
    %cst_35 = arith.constant 5.000000e-01 : f32
    %46 = vector.broadcast %cst_35 : f32 to vector<16x784xf32>
    %47 = arith.mulf %46, %45 : vector<16x784xf32>
    %48 = math.tanh %47 : vector<16x784xf32>
    %cst_36 = arith.constant 1.000000e+00 : f32
    %49 = vector.broadcast %cst_36 : f32 to vector<16x784xf32>
    %50 = arith.addf %49, %48 : vector<16x784xf32>
    %cst_37 = arith.constant 5.000000e-01 : f32
    %51 = vector.broadcast %cst_37 : f32 to vector<16x784xf32>
    %52 = arith.mulf %51, %50 : vector<16x784xf32>
    %c0_38 = arith.constant 0 : index
    %c0_39 = arith.constant 0 : index
    %53 = vector.load %arg14[%c0_38, %c0_39] : memref<16x784xf32, #tpu.memory_space<vmem>>, vector<16x784xf32>
    tpu.vector_store %arg14[%c0_38, %c0_39], %52 {strides = array<i32>} : memref<16x784xf32, #tpu.memory_space<vmem>>, vector<16x784xf32>,
    return
  }
  func.func @transform_0(%arg0: i32) -> (i32, i32) {
    %c0_i32 = arith.constant 0 : i32
    %c0_i32_0 = arith.constant 0 : i32
    return %arg0, %c0_i32 : i32, i32
  }
  func.func @transform_1(%arg0: i32) -> (i32, i32) {
    %c0_i32 = arith.constant 0 : i32
    %c0_i32_0 = arith.constant 0 : i32
    %c0_i32_1 = arith.constant 0 : i32
    return %c0_i32, %c0_i32_0 : i32, i32
  }
  func.func @transform_2(%arg0: i32) -> (i32, i32) {
    %c0_i32 = arith.constant 0 : i32
    %c0_i32_0 = arith.constant 0 : i32
    %c0_i32_1 = arith.constant 0 : i32
    return %c0_i32, %c0_i32_0 : i32, i32
  }
  func.func @transform_3(%arg0: i32) -> (i32, i32) {
    %c0_i32 = arith.constant 0 : i32
    %c0_i32_0 = arith.constant 0 : i32
    %c0_i32_1 = arith.constant 0 : i32
    return %c0_i32, %c0_i32_0 : i32, i32
  }
  func.func @transform_4(%arg0: i32) -> (i32, i32) {
    %c0_i32 = arith.constant 0 : i32
    %c0_i32_0 = arith.constant 0 : i32
    %c0_i32_1 = arith.constant 0 : i32
    return %c0_i32, %c0_i32_0 : i32, i32
  }
  func.func @transform_5(%arg0: i32) -> (i32, i32) {
    %c0_i32 = arith.constant 0 : i32
    %c0_i32_0 = arith.constant 0 : i32
    %c0_i32_1 = arith.constant 0 : i32
    return %c0_i32, %c0_i32_0 : i32, i32
  }
  func.func @transform_6(%arg0: i32) -> (i32, i32) {
    %c0_i32 = arith.constant 0 : i32
    %c0_i32_0 = arith.constant 0 : i32
    %c0_i32_1 = arith.constant 0 : i32
    return %c0_i32, %c0_i32_0 : i32, i32
  }
  func.func @transform_7(%arg0: i32) -> (i32, i32) {
    %c0_i32 = arith.constant 0 : i32
    %c0_i32_0 = arith.constant 0 : i32
    %c0_i32_1 = arith.constant 0 : i32
    return %c0_i32, %c0_i32_0 : i32, i32
  }
  func.func @transform_8(%arg0: i32) -> (i32, i32) {
    %c0_i32 = arith.constant 0 : i32
    %c0_i32_0 = arith.constant 0 : i32
    %c0_i32_1 = arith.constant 0 : i32
    return %c0_i32, %c0_i32_0 : i32, i32
  }
  func.func @transform_9(%arg0: i32) -> (i32, i32) {
    %c0_i32 = arith.constant 0 : i32
    %c0_i32_0 = arith.constant 0 : i32
    %c0_i32_1 = arith.constant 0 : i32
    return %c0_i32, %c0_i32_0 : i32, i32
  }
  func.func @transform_10(%arg0: i32) -> (i32, i32) {
    %c0_i32 = arith.constant 0 : i32
    %c0_i32_0 = arith.constant 0 : i32
    %c0_i32_1 = arith.constant 0 : i32
    return %c0_i32, %c0_i32_0 : i32, i32
  }
  func.func @transform_11(%arg0: i32) -> (i32, i32) {
    %c0_i32 = arith.constant 0 : i32
    %c0_i32_0 = arith.constant 0 : i32
    %c0_i32_1 = arith.constant 0 : i32
    return %c0_i32, %c0_i32_0 : i32, i32
  }
  func.func @transform_12(%arg0: i32) -> (i32, i32) {
    %c0_i32 = arith.constant 0 : i32
    %c0_i32_0 = arith.constant 0 : i32
    %c0_i32_1 = arith.constant 0 : i32
    return %c0_i32, %c0_i32_0 : i32, i32
  }
  func.func @transform_13(%arg0: i32) -> (i32, i32) {
    %c0_i32 = arith.constant 0 : i32
    %c0_i32_0 = arith.constant 0 : i32
    return %arg0, %c0_i32 : i32, i32
  }
}

</mosaic_0001>

<bundles_post_ra>
// kernel: tpu_custom_call.1
= control target key start
LH: loop header
LB: loop body
LE: loop exit
PB: predicated region body
PF: predicated region fallthrough
CT: control target
= control target key end

     0   :  { %vm683_vm0 = vcmask 130048   ;;  %s5396_s0 = inlined_call_operand.vmem [shape: bf16[16,784], index: 0, kind: input, shape index: {}]   ;;  %s5397_s1 = inlined_call_operand.vmem [shape: bf16[784,256], index: 1, kind: input, shape index: {}]   ;;  %s5398_s2 = inlined_call_operand.vmem [shape: f32[1,256], index: 2, kind: input, shape index: {}]   ;;  %s5399_s3 = inlined_call_operand.vmem [shape: bf16[256,128], index: 3, kind: input, shape index: {}]   ;;  %s5400_s4 = inlined_call_operand.vmem [shape: f32[1,128], index: 4, kind: input, shape index: {}]   ;;  %s5401_s5 = inlined_call_operand.vmem [shape: bf16[128,128], index: 5, kind: input, shape index: {}]   ;;  %s5402_s6 = inlined_call_operand.vmem [shape: f32[1,128], index: 6, kind: input, shape index: {}]   ;;  %s5403_s7 = inlined_call_operand.vmem [shape: bf16[128,128], index: 7, kind: input, shape index: {}]   ;;  %s5404_s8 = inlined_call_operand.vmem [shape: f32[1,128], index: 8, kind: input, shape index: {}]   ;;  %s5405_s9 = inlined_call_operand.vmem [shape: bf16[128,256], index: 9, kind: input, shape index: {}]   ;;  %s5406_s10 = inlined_call_operand.vmem [shape: f32[1,256], index: 10, kind: input, shape index: {}]   ;;  %s5407_s11 = inlined_call_operand.vmem [shape: bf16[256,784], index: 11, kind: input, shape index: {}]   ;;  %s5408_s12 = inlined_call_operand.vmem [shape: f32[1,784], index: 12, kind: input, shape index: {}]   ;;  %s5409_s13 = inlined_call_operand.hbm [shape: f32[16,784], index: 13, kind: output, shape index: {}]  }
   0x1   :  { %v2448_v0 = vld [vmem:[%s5397_s1 + $0x70] sm:$0xf]  ;;  %v3446_v1 = vld [vmem:[%s5397_s1 + $0x74] sm:$0xf0]  ;;  %v2440_v11 = vld [vmem:[%s5397_s1 + $0x60] sm:$0xf] }
   0x2   :  { %v2576_v2 = vld [vmem:[%s5397_s1 + $0x170] sm:$0xf]  ;;  %v2449_v3 = vor.u32 %v3446_v1, %v2448_v0  ;;  %v3478_v4 = vld [vmem:[%s5397_s1 + $0x174] sm:$0xf0]  ;;  %v3444_v13 = vld [vmem:[%s5397_s1 + $0x64] sm:$0xf0] }
   0x3   :  { %v2640_v5 = vld [vmem:[%s5397_s1 + $0x1f0] sm:$0xf]  ;;  %v3494_v6 = vld [vmem:[%s5397_s1 + $0x1f4] sm:$0xf0]  ;;  %v2577_v7 = vor.u32 %v3478_v4, %v2576_v2  ;;  %v2568_v14 = vld [vmem:[%s5397_s1 + $0x160] sm:$0xf]  ;;  %v2441_v16 = vor.u32 %v3444_v13, %v2440_v11 }
   0x4   :  { %v2641_v8 = vor.u32 %v3494_v6, %v2640_v5  ;;  %v2512_v9 = vld [vmem:[%s5397_s1 + $0xf0] sm:$0xf]  ;;  %v3462_v10 = vld [vmem:[%s5397_s1 + $0xf4] sm:$0xf0]  ;;  %687 = vmatpush.bf16.msra.mxu0 %v2449_v3  ;;  %v3476_v15 = vld [vmem:[%s5397_s1 + $0x164] sm:$0xf0] }
   0x5   :  { %v2513_v12 = vor.u32 %v3462_v10, %v2512_v9  ;;  %715 = vmatpush.bf16.msra.mxu2 %v2577_v7  ;;  %v2569_v17 = vor.u32 %v3476_v15, %v2568_v14  ;;  %v2632_v18 = vld [vmem:[%s5397_s1 + $0x1e0] sm:$0xf]  ;;  %v3492_v19 = vld [vmem:[%s5397_s1 + $0x1e4] sm:$0xf0]  ;;  %v2432_v23 = vld [vmem:[%s5397_s1 + $0x50] sm:$0xf] }
   0x6   :  { %729 = vmatpush.bf16.msra.mxu3 %v2641_v8  ;;  %v2504_v20 = vld [vmem:[%s5397_s1 + $0xe0] sm:$0xf]  ;;  %v2633_v21 = vor.u32 %v3492_v19, %v2632_v18  ;;  %v3460_v22 = vld [vmem:[%s5397_s1 + $0xe4] sm:$0xf0]  ;;  %v3442_v24 = vld [vmem:[%s5397_s1 + $0x54] sm:$0xf0] }
   0x7   :  { %701 = vmatpush.bf16.msra.mxu1 %v2513_v12  ;;  %v2505_v25 = vor.u32 %v3460_v22, %v2504_v20  ;;  %v2560_v26 = vld [vmem:[%s5397_s1 + $0x150] sm:$0xf]  ;;  %v3474_v27 = vld [vmem:[%s5397_s1 + $0x154] sm:$0xf0]  ;;  %v2433_v29 = vor.u32 %v3442_v24, %v2432_v23  ;;  %v2424_v35 = vld [vmem:[%s5397_s1 + $0x40] sm:$0xf] }
   0x8   :  { %v2624_v28 = vld [vmem:[%s5397_s1 + $0x1d0] sm:$0xf]  ;;  %688 = vmatpush.bf16.msra.mxu0 %v2441_v16  ;;  %v3490_v30 = vld [vmem:[%s5397_s1 + $0x1d4] sm:$0xf0]  ;;  %v2561_v33 = vor.u32 %v3474_v27, %v2560_v26  ;;  %v3440_v36 = vld [vmem:[%s5397_s1 + $0x44] sm:$0xf0] }
   0x9   :  { %v2496_v31 = vld [vmem:[%s5397_s1 + $0xd0] sm:$0xf]  ;;  %v3458_v32 = vld [vmem:[%s5397_s1 + $0xd4] sm:$0xf0]  ;;  %716 = vmatpush.bf16.msra.mxu2 %v2569_v17  ;;  %v2625_v34 = vor.u32 %v3490_v30, %v2624_v28  ;;  %v2552_v37 = vld [vmem:[%s5397_s1 + $0x140] sm:$0xf]  ;;  %v2425_v44 = vor.u32 %v3440_v36, %v2424_v35 }
   0xa   :  { %730 = vmatpush.bf16.msra.mxu3 %v2633_v21  ;;  %v2497_v38 = vor.u32 %v3458_v32, %v2496_v31  ;;  %v3472_v39 = vld [vmem:[%s5397_s1 + $0x144] sm:$0xf0]  ;;  %v2616_v40 = vld [vmem:[%s5397_s1 + $0x1c0] sm:$0xf]  ;;  %v2416_v47 = vld [vmem:[%s5397_s1 + $0x30] sm:$0xf] }
   0xb   :  { %702 = vmatpush.bf16.msra.mxu1 %v2505_v25  ;;  %v3488_v41 = vld [vmem:[%s5397_s1 + $0x1c4] sm:$0xf0]  ;;  %v2488_v42 = vld [vmem:[%s5397_s1 + $0xc0] sm:$0xf]  ;;  %v2553_v45 = vor.u32 %v3472_v39, %v2552_v37  ;;  %v3438_v48 = vld [vmem:[%s5397_s1 + $0x34] sm:$0xf0] }
   0xc   :  { %v3456_v43 = vld [vmem:[%s5397_s1 + $0xc4] sm:$0xf0]  ;;  %689 = vmatpush.bf16.msra.mxu0 %v2433_v29  ;;  %v2617_v46 = vor.u32 %v3488_v41, %v2616_v40  ;;  %v2544_v49 = vld [vmem:[%s5397_s1 + $0x130] sm:$0xf]  ;;  %v3470_v51 = vld [vmem:[%s5397_s1 + $0x134] sm:$0xf0]  ;;  %v2417_v56 = vor.u32 %v3438_v48, %v2416_v47 }
   0xd   :  { %717 = vmatpush.bf16.msra.mxu2 %v2561_v33  ;;  %v2489_v50 = vor.u32 %v3456_v43, %v2488_v42  ;;  %v2608_v52 = vld [vmem:[%s5397_s1 + $0x1b0] sm:$0xf]  ;;  %v3486_v53 = vld [vmem:[%s5397_s1 + $0x1b4] sm:$0xf0]  ;;  %v2545_v57 = vor.u32 %v3470_v51, %v2544_v49  ;;  %v2408_v59 = vld [vmem:[%s5397_s1 + $0x20] sm:$0xf] }
   0xe   :  { %731 = vmatpush.bf16.msra.mxu3 %v2625_v34  ;;  %v2480_v54 = vld [vmem:[%s5397_s1 + $0xb0] sm:$0xf]  ;;  %v3454_v55 = vld [vmem:[%s5397_s1 + $0xb4] sm:$0xf0]  ;;  %v2609_v58 = vor.u32 %v3486_v53, %v2608_v52  ;;  %v3436_v60 = vld [vmem:[%s5397_s1 + $0x24] sm:$0xf0] }
   0xf   :  { %703 = vmatpush.bf16.msra.mxu1 %v2497_v38  ;;  %v2536_v61 = vld [vmem:[%s5397_s1 + $0x120] sm:$0xf]  ;;  %v2481_v62 = vor.u32 %v3454_v55, %v2480_v54  ;;  %v3468_v63 = vld [vmem:[%s5397_s1 + $0x124] sm:$0xf0]  ;;  %v2409_v4 = vor.u32 %v3436_v60, %v2408_v59  ;;  %v2400_v5 = vld [vmem:[%s5397_s1 + $0x10] sm:$0xf] }
  0x10   :  { %690 = vmatpush.bf16.msra.mxu0 %v2425_v44  ;;  %v2600_v0 = vld [vmem:[%s5397_s1 + $0x1a0] sm:$0xf]  ;;  %v3484_v1 = vld [vmem:[%s5397_s1 + $0x1a4] sm:$0xf0]  ;;  %v2537_v6 = vor.u32 %v3468_v63, %v2536_v61  ;;  %v3434_v8 = vld [vmem:[%s5397_s1 + $0x14] sm:$0xf0] }
  0x11   :  { %718 = vmatpush.bf16.msra.mxu2 %v2553_v45  ;;  %v2472_v2 = vld [vmem:[%s5397_s1 + $0xa0] sm:$0xf]  ;;  %v3452_v3 = vld [vmem:[%s5397_s1 + $0xa4] sm:$0xf0]  ;;  %v2601_v7 = vor.u32 %v3484_v1, %v2600_v0  ;;  %v2528_v9 = vld [vmem:[%s5397_s1 + $0x110] sm:$0xf]  ;;  %v2401_v18 = vor.u32 %v3434_v8, %v2400_v5 }
  0x12   :  { %732 = vmatpush.bf16.msra.mxu3 %v2617_v46  ;;  %v3466_v10 = vld [vmem:[%s5397_s1 + $0x114] sm:$0xf0]  ;;  %v2473_v11 = vor.u32 %v3452_v3, %v2472_v2  ;;  %v2592_v12 = vld [vmem:[%s5397_s1 + $0x190] sm:$0xf]  ;;  %v2392_v16 = vld [vmem:[%s5397_s1] sm:$0xf] }
  0x13   :  { %704 = vmatpush.bf16.msra.mxu1 %v2489_v50  ;;  %v3482_v13 = vld [vmem:[%s5397_s1 + $0x194] sm:$0xf0]  ;;  %v2464_v14 = vld [vmem:[%s5397_s1 + $0x90] sm:$0xf]  ;;  %v3432_v17 = vld [vmem:[%s5397_s1 + $0x4] sm:$0xf0]  ;;  %v2529_v23 = vor.u32 %v3466_v10, %v2528_v9 }
  0x14   :  { %691 = vmatpush.bf16.msra.mxu0 %v2417_v56  ;;  %v3450_v15 = vld [vmem:[%s5397_s1 + $0x94] sm:$0xf0]  ;;  %v2520_v19 = vld [vmem:[%s5397_s1 + $0x100] sm:$0xf]  ;;  %v3464_v20 = vld [vmem:[%s5397_s1 + $0x104] sm:$0xf0]  ;;  %v2593_v24 = vor.u32 %v3482_v13, %v2592_v12  ;;  %v2393_v35 = vor.u32 %v3432_v17, %v2392_v16 }
  0x15   :  { %719 = vmatpush.bf16.msra.mxu2 %v2545_v57  ;;  %v2584_v21 = vld [vmem:[%s5397_s1 + $0x180] sm:$0xf]  ;;  %v3480_v22 = vld [vmem:[%s5397_s1 + $0x184] sm:$0xf0]  ;;  %v2704_v25 = vld [vmem:[%s5397_s1 + $0x270] sm:$0xf]  ;;  %v2465_v28 = vor.u32 %v3450_v15, %v2464_v14  ;;  %v2521_v39 = vor.u32 %v3464_v20, %v2520_v19 }
  0x16   :  { %733 = vmatpush.bf16.msra.mxu3 %v2609_v58  ;;  %v3510_v26 = vld [vmem:[%s5397_s1 + $0x274] sm:$0xf0]  ;;  %v3445_v27 = vld [vmem:[%s5397_s1 + $0x74] sm:$0xf]  ;;  %v2450_v29 = vld [vmem:[%s5397_s1 + $0x78] sm:$0xf0]  ;;  %v2585_v40 = vor.u32 %v3480_v22, %v2584_v21 }
  0x17   :  { %705 = vmatpush.bf16.msra.mxu1 %v2481_v62  ;;  %v2456_v30 = vld [vmem:[%s5397_s1 + $0x80] sm:$0xf]  ;;  %v3448_v31 = vld [vmem:[%s5397_s1 + $0x84] sm:$0xf0]  ;;  %v3428_v33 = vld [vmem:[%s5396_s0 + $0x20] sm:$0xf0]  ;;  %v2705_v44 = vor.u32 %v3510_v26, %v2704_v25  ;;  %v2453_v45 = vor.u32 %v3445_v27, %v2450_v29 }
  0x18   :  { %692 = vmatpush.bf16.msra.mxu0 %v2409_v4  ;;  %v2372_v32 = vld [vmem:[%s5396_s0 + $0x8] sm:$0xf]  ;;  %v2768_v34 = vld [vmem:[%s5397_s1 + $0x2f0] sm:$0xf]  ;;  %v3526_v36 = vld [vmem:[%s5397_s1 + $0x2f4] sm:$0xf0]  ;;  %v2457_v49 = vor.u32 %v3448_v31, %v2456_v30 }
  0x19   :  { %720 = vmatpush.bf16.msra.mxu2 %v2537_v6  ;;  %v2776_v37 = vld [vmem:[%s5397_s1 + $0x300] sm:$0xf]  ;;  %v3528_v38 = vld [vmem:[%s5397_s1 + $0x304] sm:$0xf0]  ;;  %v3461_v41 = vld [vmem:[%s5397_s1 + $0xf4] sm:$0xf]  ;;  %v4071_v54 = vor.u32 %v3428_v33, %v2372_v32  ;;  %v2769_v55 = vor.u32 %v3526_v36, %v2768_v34 }
  0x1a   :  { %734 = vmatpush.bf16.msra.mxu3 %v2601_v7  ;;  %v2514_v42 = vld [vmem:[%s5397_s1 + $0xf8] sm:$0xf0]  ;;  %v2364_v43 = vld [vmem:[%s5396_s0] sm:$0xf]  ;;  %v3425_v47 = vld [vmem:[%s5396_s0 + $0xc] sm:$0xf]  ;;  %v2777_v50 = vor.u32 %v3528_v38, %v2776_v37 }
  0x1b   :  { %706 = vmatpush.bf16.msra.mxu1 %v2473_v11  ;;  %v3427_v46 = vld [vmem:[%s5396_s0 + $0x18] sm:$0xf0]  ;;  %v2374_v48 = vld [vmem:[%s5396_s0 + $0x24] sm:$0xf0]  ;;  %v2696_v51 = vld [vmem:[%s5397_s1 + $0x260] sm:$0xf]  ;;  %v2517_v59 = vor.u32 %v3461_v41, %v2514_v42 }
  0x1c   :  { %693 = vmatpush.bf16.msra.mxu0 %v2401_v18  ;;  %v3508_v52 = vld [vmem:[%s5397_s1 + $0x264] sm:$0xf0]  ;;  %v3443_v53 = vld [vmem:[%s5397_s1 + $0x64] sm:$0xf]  ;;  %v2442_v56 = vld [vmem:[%s5397_s1 + $0x68] sm:$0xf0]  ;;  %v4082_v60 = vor.u32 %v3427_v46, %v2364_v43  ;;  %v4090_v63 = vor.u32 %v3425_v47, %v2374_v48 }
  0x1d   :  { %721 = vmatpush.bf16.msra.mxu2 %v2529_v23  ;;  %v3424_v57 = vld [vmem:[%s5396_s0 + $0x4] sm:$0xf]  ;;  %v2366_v58 = vld [vmem:[%s5396_s0 + $0x1c] sm:$0xf0]  ;;  %v3524_v62 = vld [vmem:[%s5397_s1 + $0x2e4] sm:$0xf0]  ;;  %v2697_v0 = vor.u32 %v3508_v52, %v2696_v51  ;;  %v2445_v3 = vor.u32 %v3443_v53, %v2442_v56 }
  0x1e   :  { %735 = vmatpush.bf16.msra.mxu3 %v2593_v24  ;;  %v2760_v61 = vld [vmem:[%s5397_s1 + $0x2e0] sm:$0xf]  ;;  %v3459_v1 = vld [vmem:[%s5397_s1 + $0xe4] sm:$0xf]  ;;  %v2506_v2 = vld [vmem:[%s5397_s1 + $0xe8] sm:$0xf0]  ;;  %v4098_v4 = vor.u32 %v3424_v57, %v2366_v58 }
  0x1f   :  { %707 = vmatpush.bf16.msra.mxu1 %v2465_v28  ;;  %v2688_v5 = vld [vmem:[%s5397_s1 + $0x250] sm:$0xf]  ;;  %v3506_v6 = vld [vmem:[%s5397_s1 + $0x254] sm:$0xf0]  ;;  %v2761_v7 = vor.u32 %v3524_v62, %v2760_v61  ;;  %v3441_v8 = vld [vmem:[%s5397_s1 + $0x54] sm:$0xf]  ;;  %v2509_v10 = vor.u32 %v3459_v1, %v2506_v2 }
  0x20   :  { %694 = vmatpush.bf16.msra.mxu0 %v2393_v35  ;;  %v2434_v9 = vld [vmem:[%s5397_s1 + $0x58] sm:$0xf0]  ;;  %v2752_v11 = vld [vmem:[%s5397_s1 + $0x2d0] sm:$0xf]  ;;  %v3522_v12 = vld [vmem:[%s5397_s1 + $0x2d4] sm:$0xf0]  ;;  %v2689_v13 = vor.u32 %v3506_v6, %v2688_v5 }
  0x21   :  { %722 = vmatpush.bf16.msra.mxu2 %v2521_v39  ;;  %v3457_v14 = vld [vmem:[%s5397_s1 + $0xd4] sm:$0xf]  ;;  %v2498_v15 = vld [vmem:[%s5397_s1 + $0xd8] sm:$0xf0]  ;;  %v2437_v16 = vor.u32 %v3441_v8, %v2434_v9  ;;  %v2680_v17 = vld [vmem:[%s5397_s1 + $0x240] sm:$0xf]  ;;  %v2753_v19 = vor.u32 %v3522_v12, %v2752_v11 }
  0x22   :  { %736 = vmatpush.bf16.msra.mxu3 %v2585_v40  ;;  %v3504_v18 = vld [vmem:[%s5397_s1 + $0x244] sm:$0xf0]  ;;  %v3439_v20 = vld [vmem:[%s5397_s1 + $0x44] sm:$0xf]  ;;  %v2426_v21 = vld [vmem:[%s5397_s1 + $0x48] sm:$0xf0]  ;;  %v2501_v22 = vor.u32 %v3457_v14, %v2498_v15 }
  0x23   :  { %708 = vmatpush.bf16.msra.mxu1 %v2457_v49  ;;  %695 = vmatmul.bf16.vlgmr.msra.gmra.mxu0 %v4082_v60  ;;  %v2744_v23 = vld [vmem:[%s5397_s1 + $0x2c0] sm:$0xf]  ;;  %v3520_v24 = vld [vmem:[%s5397_s1 + $0x2c4] sm:$0xf0]  ;;  %v2681_v25 = vor.u32 %v3504_v18, %v2680_v17  ;;  %v3455_v26 = vld [vmem:[%s5397_s1 + $0xc4] sm:$0xf]  ;;  %v2429_v28 = vor.u32 %v3439_v20, %v2426_v21 }
  0x24   :  { %743 = vmatpush.bf16.msrb.mxu0 %v2705_v44  ;;  %723 = vmatmul.bf16.vlgmr.msra.gmra.mxu2 %v4071_v54  ;;  %v2490_v27 = vld [vmem:[%s5397_s1 + $0xc8] sm:$0xf0]  ;;  %v2672_v29 = vld [vmem:[%s5397_s1 + $0x230] sm:$0xf]  ;;  %v3502_v30 = vld [vmem:[%s5397_s1 + $0x234] sm:$0xf0]  ;;  %v2745_v31 = vor.u32 %v3520_v24, %v2744_v23 }
  0x25   :  { %778 = vmatpush.bf16.msrb.mxu2 %v2777_v50  ;;  %737 = vmatmul.bf16.vlgmr.msra.gmra.mxu3 %v4090_v63  ;;  %v3437_v32 = vld [vmem:[%s5397_s1 + $0x34] sm:$0xf]  ;;  %v2418_v33 = vld [vmem:[%s5397_s1 + $0x38] sm:$0xf0]  ;;  %v2736_v34 = vld [vmem:[%s5397_s1 + $0x2b0] sm:$0xf]  ;;  %v2493_v35 = vor.u32 %v3455_v26, %v2490_v27  ;;  %v2673_v39 = vor.u32 %v3502_v30, %v2672_v29 }
  0x26   :  { %785 = vmatpush.bf16.msrb.mxu3 %v2453_v45  ;;  %709 = vmatmul.bf16.vlgmr.msra.gmra.mxu1 %v4098_v4  ;;  %v3518_v36 = vld [vmem:[%s5397_s1 + $0x2b4] sm:$0xf0]  ;;  %v3430_v38 = vld [vmem:[%s5396_s0 + $0x30] sm:$0xf0]  ;;  %v2482_v41 = vld [vmem:[%s5397_s1 + $0xb8] sm:$0xf0]  ;;  %v2421_v42 = vor.u32 %v3437_v32, %v2418_v33 }
  0x27   :  { %757 = vmatpush.bf16.msrb.mxu1 %v2769_v55  ;;  %v2388_v37 = vld [vmem:[%s5396_s0 + $0x18] sm:$0xf]  ;;  %v3453_v40 = vld [vmem:[%s5397_s1 + $0xb4] sm:$0xf]  ;;  %v2664_v43 = vld [vmem:[%s5397_s1 + $0x220] sm:$0xf]  ;;  %v2737_v45 = vor.u32 %v3518_v36, %v2736_v34 }
  0x28   :  { %744 = vmatpush.bf16.msrb.mxu0 %v2697_v0  ;;  %v3500_v44 = vld [vmem:[%s5397_s1 + $0x224] sm:$0xf0]  ;;  %v3435_v46 = vld [vmem:[%s5397_s1 + $0x24] sm:$0xf]  ;;  %v2410_v47 = vld [vmem:[%s5397_s1 + $0x28] sm:$0xf0]  ;;  %v4194_v48 = vor.u32 %v3430_v38, %v2388_v37  ;;  %v2485_v49 = vor.u32 %v3453_v40, %v2482_v41 }
  0x29   :  { %799 = vmatpush.bf16.msra.mxu2 %v2517_v59  ;;  %v2728_v50 = vld [vmem:[%s5397_s1 + $0x2a0] sm:$0xf]  ;;  %v3516_v51 = vld [vmem:[%s5397_s1 + $0x2a4] sm:$0xf0]  ;;  %v2665_v52 = vor.u32 %v3500_v44, %v2664_v43  ;;  %v3451_v53 = vld [vmem:[%s5397_s1 + $0xa4] sm:$0xf]  ;;  %v2413_v56 = vor.u32 %v3435_v46, %v2410_v47 }
  0x2a   :  { %786 = vmatpush.bf16.msrb.mxu3 %v2445_v3  ;;  %v2474_v55 = vld [vmem:[%s5397_s1 + $0xa8] sm:$0xf0]  ;;  %v2656_v57 = vld [vmem:[%s5397_s1 + $0x210] sm:$0xf]  ;;  %v3498_v58 = vld [vmem:[%s5397_s1 + $0x214] sm:$0xf0]  ;;  %v2729_v61 = vor.u32 %v3516_v51, %v2728_v50 }
  0x2b   :  { %758 = vmatpush.bf16.msrb.mxu1 %v2761_v7  ;;  %v3433_v59 = vld [vmem:[%s5397_s1 + $0x14] sm:$0xf]  ;;  %v2402_v62 = vld [vmem:[%s5397_s1 + $0x18] sm:$0xf0]  ;;  %v2720_v0 = vld [vmem:[%s5397_s1 + $0x290] sm:$0xf]  ;;  %v2477_v2 = vor.u32 %v3451_v53, %v2474_v55  ;;  %v2657_v7 = vor.u32 %v3498_v58, %v2656_v57 }
  0x2c   :  { %745 = vmatpush.bf16.msrb.mxu0 %v2689_v13  ;;  %v3514_v1 = vld [vmem:[%s5397_s1 + $0x294] sm:$0xf0]  ;;  %v3449_v3 = vld [vmem:[%s5397_s1 + $0x94] sm:$0xf]  ;;  %v2466_v5 = vld [vmem:[%s5397_s1 + $0x98] sm:$0xf0]  ;;  %v2405_v11 = vor.u32 %v3433_v59, %v2402_v62 }
  0x2d   :  { %800 = vmatpush.bf16.msra.mxu2 %v2509_v10  ;;  %v2648_v6 = vld [vmem:[%s5397_s1 + $0x200] sm:$0xf]  ;;  %v3496_v8 = vld [vmem:[%s5397_s1 + $0x204] sm:$0xf0]  ;;  %v3431_v9 = vld [vmem:[%s5397_s1 + $0x4] sm:$0xf]  ;;  %v2721_v15 = vor.u32 %v3514_v1, %v2720_v0 }
  0x2e   :  { %787 = vmatpush.bf16.msrb.mxu3 %v2437_v16  ;;  %v2394_v10 = vld [vmem:[%s5397_s1 + $0x8] sm:$0xf0]  ;;  %v3477_v12 = vld [vmem:[%s5397_s1 + $0x174] sm:$0xf]  ;;  %v2578_v13 = vld [vmem:[%s5397_s1 + $0x178] sm:$0xf0]  ;;  %v2649_v23 = vor.u32 %v3496_v8, %v2648_v6 }
  0x2f   :  { %759 = vmatpush.bf16.msrb.mxu1 %v2753_v19  ;;  %v3509_v14 = vld [vmem:[%s5397_s1 + $0x274] sm:$0xf]  ;;  %v2706_v16 = vld [vmem:[%s5397_s1 + $0x278] sm:$0xf0]  ;;  %v2712_v17 = vld [vmem:[%s5397_s1 + $0x280] sm:$0xf]  ;;  %v2469_v19 = vor.u32 %v3449_v3, %v2466_v5  ;;  %v2397_v27 = vor.u32 %v3431_v9, %v2394_v10 }
  0x30   :  { %746 = vmatpush.bf16.msrb.mxu0 %v2681_v25  ;;  %v3512_v18 = vld [vmem:[%s5397_s1 + $0x284] sm:$0xf0]  ;;  %v2380_v20 = vld [vmem:[%s5396_s0 + $0x10] sm:$0xf]  ;;  %v3429_v21 = vld [vmem:[%s5396_s0 + $0x28] sm:$0xf0]  ;;  %v2709_v32 = vor.u32 %v3509_v14, %v2706_v16 }
  0x31   :  { %801 = vmatpush.bf16.msra.mxu2 %v2501_v22  ;;  %v3447_v22 = vld [vmem:[%s5397_s1 + $0x84] sm:$0xf]  ;;  %v2458_v24 = vld [vmem:[%s5397_s1 + $0x88] sm:$0xf0]  ;;  %v3493_v25 = vld [vmem:[%s5397_s1 + $0x1f4] sm:$0xf]  ;;  %v2713_v33 = vor.u32 %v3512_v18, %v2712_v17  ;;  %v4300_v37 = vor.u32 %v3429_v21, %v2380_v20 }
  0x32   :  { %788 = vmatpush.bf16.msrb.mxu3 %v2429_v28  ;;  %v2642_v26 = vld [vmem:[%s5397_s1 + $0x1f8] sm:$0xf0]  ;;  %v2581_v28 = vor.u32 %v3477_v12, %v2578_v13  ;;  %v3525_v29 = vld [vmem:[%s5397_s1 + $0x2f4] sm:$0xf]  ;;  %v2382_v34 = vld [vmem:[%s5396_s0 + $0x2c] sm:$0xf0]  ;;  %v2461_v38 = vor.u32 %v3447_v22, %v2458_v24 }
  0x33   :  { %760 = vmatpush.bf16.msrb.mxu1 %v2745_v31  ;;  %v2770_v30 = vld [vmem:[%s5397_s1 + $0x2f8] sm:$0xf0]  ;;  %v3426_v31 = vld [vmem:[%s5396_s0 + $0x14] sm:$0xf]  ;;  %v2570_v36 = vld [vmem:[%s5397_s1 + $0x168] sm:$0xf0]  ;;  %v2645_v41 = vor.u32 %v3493_v25, %v2642_v26 }
  0x34   :  { %747 = vmatpush.bf16.msrb.mxu0 %v2673_v39  ;;  %2782 = vmatmul.msk.bf16.vlgmr.msrb.gmra.mxu2 %vm683_vm0, %v4194_v48  ;;  %v3507_v39 = vld [vmem:[%s5397_s1 + $0x264] sm:$0xf]  ;;  %v2698_v40 = vld [vmem:[%s5397_s1 + $0x268] sm:$0xf0]  ;;  %v4311_v44 = vor.u32 %v3426_v31, %v2382_v34  ;;  %v3473_v51 = vld [vmem:[%s5397_s1 + $0x154] sm:$0xf] }
  0x35   :  { %802 = vmatpush.bf16.msra.mxu2 %v2493_v35  ;;  %v3475_v35 = vld [vmem:[%s5397_s1 + $0x164] sm:$0xf]  ;;  %v2634_v46 = vld [vmem:[%s5397_s1 + $0x1e8] sm:$0xf0]  ;;  %v2701_v50 = vor.u32 %v3507_v39, %v2698_v40  ;;  %v3505_v53 = vld [vmem:[%s5397_s1 + $0x254] sm:$0xf] }
  0x36   :  { %789 = vmatpush.bf16.msrb.mxu3 %v2421_v42  ;;  %v2773_v42 = vor.u32 %v3525_v29, %v2770_v30  ;;  %v3491_v43 = vld [vmem:[%s5397_s1 + $0x1e4] sm:$0xf]  ;;  %v2690_v55 = vld [vmem:[%s5397_s1 + $0x258] sm:$0xf0]  ;;  %v3489_v58 = vld [vmem:[%s5397_s1 + $0x1d4] sm:$0xf] }
  0x37   :  { %761 = vmatpush.bf16.msrb.mxu1 %v2737_v45  ;;  %v2573_v45 = vor.u32 %v3475_v35, %v2570_v36  ;;  %v3523_v47 = vld [vmem:[%s5397_s1 + $0x2e4] sm:$0xf]  ;;  %v3521_v62 = vld [vmem:[%s5397_s1 + $0x2d4] sm:$0xf]  ;;  %v2754_v0 = vld [vmem:[%s5397_s1 + $0x2d8] sm:$0xf0]  ;;  %v2693_v1 = vor.u32 %v3505_v53, %v2690_v55 }
  0x38   :  { %748 = vmatpush.bf16.msrb.mxu0 %v2665_v52  ;;  %v2562_v52 = vld [vmem:[%s5397_s1 + $0x158] sm:$0xf0]  ;;  %v2554_v3 = vld [vmem:[%s5397_s1 + $0x148] sm:$0xf0]  ;;  %v3503_v5 = vld [vmem:[%s5397_s1 + $0x244] sm:$0xf]  ;;  %v2757_v9 = vor.u32 %v3521_v62, %v2754_v0 }
  0x39   :  { %803 = vmatpush.bf16.msra.mxu2 %v2485_v49  ;;  %v2762_v49 = vld [vmem:[%s5397_s1 + $0x2e8] sm:$0xf0]  ;;  %v2565_v59 = vor.u32 %v3473_v51, %v2562_v52  ;;  %v3519_v10 = vld [vmem:[%s5397_s1 + $0x2c4] sm:$0xf]  ;;  %v3469_v12 = vld [vmem:[%s5397_s1 + $0x134] sm:$0xf] }
  0x3a   :  { %790 = vmatpush.bf16.msrb.mxu3 %v2413_v56  ;;  %v2637_v56 = vor.u32 %v3491_v43, %v2634_v46  ;;  %v2765_v57 = vor.u32 %v3523_v47, %v2762_v49  ;;  %v2682_v6 = vld [vmem:[%s5397_s1 + $0x248] sm:$0xf0]  ;;  %v2546_v14 = vld [vmem:[%s5397_s1 + $0x138] sm:$0xf0] }
  0x3b   :  { %762 = vmatpush.bf16.msrb.mxu1 %v2729_v61  ;;  %v2626_v61 = vld [vmem:[%s5397_s1 + $0x1d8] sm:$0xf0]  ;;  %v2685_v13 = vor.u32 %v3503_v5, %v2682_v6 }
  0x3c   :  { %749 = vmatpush.bf16.msrb.mxu0 %v2657_v7  ;;  %v3487_v7 = vld [vmem:[%s5397_s1 + $0x1c4] sm:$0xf]  ;;  %v2629_v8 = vor.u32 %v3489_v58, %v2626_v61 }
  0x3d   :  { %804 = vmatpush.bf16.msra.mxu2 %v2477_v2  ;;  %v3471_v2 = vld [vmem:[%s5397_s1 + $0x144] sm:$0xf] }
  0x3e   :  { %791 = vmatpush.bf16.msrb.mxu3 %v2405_v11  ;;  %v2557_v11 = vor.u32 %v3471_v2, %v2554_v3 }
  0x3f   :  { %763 = vmatpush.bf16.msrb.mxu1 %v2721_v15 }
  0x40   :  { %750 = vmatpush.bf16.msrb.mxu0 %v2649_v23 }
  0x41   :  { %805 = vmatpush.bf16.msra.mxu2 %v2469_v19 }
  0x42   :  { %792 = vmatpush.bf16.msrb.mxu3 %v2397_v27 }
  0x43   :  { %764 = vmatpush.bf16.msrb.mxu1 %v2713_v33  ;;  %751 = vmatmul.bf16.vlgmr.msrb.gmra.mxu0 %v4300_v37 }
  0x44   :  { %813 = vmatpush.bf16.msra.mxu0 %v2581_v28 }
  0x45   :  { %806 = vmatpush.bf16.msra.mxu2 %v2461_v38  ;;  %793 = vmatmul.bf16.vlgmr.msrb.gmra.mxu3 %v4082_v60  ;;  %v2746_v60 = vld [vmem:[%s5397_s1 + $0x2c8] sm:$0xf0] }
  0x46   :  { %841 = vmatpush.bf16.msra.mxu3 %v2709_v32  ;;  %765 = vmatmul.bf16.vlgmr.msrb.gmra.mxu1 %v4311_v44 }
  0x47   :  { %827 = vmatpush.bf16.msra.mxu1 %v2645_v41 }
  0x48   :  { %814 = vmatpush.bf16.msra.mxu0 %v2573_v45  ;;  %807 = vmatmul.bf16.vlgmr.msra.gmra.mxu2 %v4098_v4  ;;  %v2618_v4 = vld [vmem:[%s5397_s1 + $0x1c8] sm:$0xf0] }
  0x49   :  { %855 = vmatpush.bf16.msrb.mxu2 %v2773_v42 }
  0x4a   :  { %842 = vmatpush.bf16.msra.mxu3 %v2701_v50 }
  0x4b   :  { %828 = vmatpush.bf16.msra.mxu1 %v2637_v56 }
  0x4c   :  { %815 = vmatpush.bf16.msra.mxu0 %v2565_v59 }
  0x4d   :  { %856 = vmatpush.bf16.msrb.mxu2 %v2765_v57 }
  0x4e   :  { %843 = vmatpush.bf16.msra.mxu3 %v2693_v1 }
  0x4f   :  { %18 = vsyncpa [#allocation3], 0  ;;  %v3501_v15 = vld [vmem:[%s5397_s1 + $0x234] sm:$0xf]  ;;  %v2674_v16 = vld [vmem:[%s5397_s1 + $0x238] sm:$0xf0]  ;;  %829 = vmatpush.bf16.msra.mxu1 %v2629_v8  ;;  %v2621_v17 = vor.u32 %v3487_v7, %v2618_v4  ;;  %v2749_v18 = vor.u32 %v3519_v10, %v2746_v60  ;;  %v2549_v20 = vor.u32 %v3469_v12, %v2546_v14 }
  0x50   :  { %v3485_v19 = vld [vmem:[%s5397_s1 + $0x1b4] sm:$0xf]  ;;  %816 = vmatpush.bf16.msra.mxu0 %v2557_v11  ;;  %v2610_v21 = vld [vmem:[%s5397_s1 + $0x1b8] sm:$0xf0]  ;;  %v2677_v24 = vor.u32 %v3501_v15, %v2674_v16  ;;  %v3467_v25 = vld [vmem:[%s5397_s1 + $0x124] sm:$0xf] }
  0x51   :  { %857 = vmatpush.bf16.msrb.mxu2 %v2757_v9  ;;  %v3517_v22 = vld [vmem:[%s5397_s1 + $0x2b4] sm:$0xf]  ;;  %v2738_v23 = vld [vmem:[%s5397_s1 + $0x2b8] sm:$0xf0]  ;;  %v2538_v26 = vld [vmem:[%s5397_s1 + $0x128] sm:$0xf0]  ;;  %v2613_v29 = vor.u32 %v3485_v19, %v2610_v21 }
  0x52   :  { %844 = vmatpush.bf16.msra.mxu3 %v2685_v13  ;;  %v3499_v27 = vld [vmem:[%s5397_s1 + $0x224] sm:$0xf]  ;;  %v2666_v28 = vld [vmem:[%s5397_s1 + $0x228] sm:$0xf0]  ;;  %v2741_v30 = vor.u32 %v3517_v22, %v2738_v23  ;;  %v2541_v32 = vor.u32 %v3467_v25, %v2538_v26  ;;  %v3465_v38 = vld [vmem:[%s5397_s1 + $0x114] sm:$0xf] }
  0x53   :  { %830 = vmatpush.bf16.msra.mxu1 %v2621_v17  ;;  %v3483_v31 = vld [vmem:[%s5397_s1 + $0x1a4] sm:$0xf]  ;;  %v2602_v33 = vld [vmem:[%s5397_s1 + $0x1a8] sm:$0xf0]  ;;  %v2669_v36 = vor.u32 %v3499_v27, %v2666_v28  ;;  %v2530_v39 = vld [vmem:[%s5397_s1 + $0x118] sm:$0xf0] }
  0x54   :  { %817 = vmatpush.bf16.msra.mxu0 %v2549_v20  ;;  %v3515_v34 = vld [vmem:[%s5397_s1 + $0x2a4] sm:$0xf]  ;;  %v2730_v35 = vld [vmem:[%s5397_s1 + $0x2a8] sm:$0xf0]  ;;  %v3497_v40 = vld [vmem:[%s5397_s1 + $0x214] sm:$0xf]  ;;  %v2605_v42 = vor.u32 %v3483_v31, %v2602_v33  ;;  %v2533_v46 = vor.u32 %v3465_v38, %v2530_v39 }
  0x55   :  { %858 = vmatpush.bf16.msrb.mxu2 %v2749_v18  ;;  %v2658_v41 = vld [vmem:[%s5397_s1 + $0x218] sm:$0xf0]  ;;  %v2733_v43 = vor.u32 %v3515_v34, %v2730_v35  ;;  %v3481_v45 = vld [vmem:[%s5397_s1 + $0x194] sm:$0xf]  ;;  %v3463_v52 = vld [vmem:[%s5397_s1 + $0x104] sm:$0xf] }
  0x56   :  { %845 = vmatpush.bf16.msra.mxu3 %v2677_v24  ;;  %v2594_v47 = vld [vmem:[%s5397_s1 + $0x198] sm:$0xf0]  ;;  %v3513_v49 = vld [vmem:[%s5397_s1 + $0x294] sm:$0xf]  ;;  %v2661_v51 = vor.u32 %v3497_v40, %v2658_v41  ;;  %v2522_v53 = vld [vmem:[%s5397_s1 + $0x108] sm:$0xf0] }
  0x57   :  { %831 = vmatpush.bf16.msra.mxu1 %v2613_v29  ;;  %v2722_v50 = vld [vmem:[%s5397_s1 + $0x298] sm:$0xf0]  ;;  %v3495_v55 = vld [vmem:[%s5397_s1 + $0x204] sm:$0xf]  ;;  %v2650_v56 = vld [vmem:[%s5397_s1 + $0x208] sm:$0xf0]  ;;  %v2597_v59 = vor.u32 %v3481_v45, %v2594_v47  ;;  %v2525_v62 = vor.u32 %v3463_v52, %v2522_v53 }
  0x58   :  { %818 = vmatpush.bf16.msra.mxu0 %v2541_v32  ;;  %v3527_v57 = vld [vmem:[%s5397_s1 + $0x304] sm:$0xf]  ;;  %v2778_v58 = vld [vmem:[%s5397_s1 + $0x308] sm:$0xf0]  ;;  %v2725_v61 = vor.u32 %v3513_v49, %v2722_v50  ;;  %v2653_v2 = vor.u32 %v3495_v55, %v2650_v56  ;;  %v3536_v9 = vld [vmem:[%s5399_s3 + $0x38] sm:$0xff]  ;;  %s3750_s26 = smov 896  }
  0x59   :  { %859 = vmatpush.bf16.msrb.mxu2 %v2741_v30  ;;  %v3479_v0 = vld [vmem:[%s5397_s1 + $0x184] sm:$0xf]  ;;  %v2586_v1 = vld [vmem:[%s5397_s1 + $0x188] sm:$0xf0]  ;;  %v2781_v6 = vor.u32 %v3527_v57, %v2778_v58  ;;  %v3535_v4 = vld [vmem:[%s5399_s3 + $0x30] sm:$0xff]  ;;  %s3751_s27 = smov 56  }
  0x5a   :  { %846 = vmatpush.bf16.msra.mxu3 %v2669_v36  ;;  %v3511_v3 = vld [vmem:[%s5397_s1 + $0x284] sm:$0xf]  ;;  %v2714_v5 = vld [vmem:[%s5397_s1 + $0x288] sm:$0xf0]  ;;  %v2589_v7 = vor.u32 %v3479_v0, %v2586_v1  ;;  %v152_v10 = vld [vmem:[%s5398_s2] sm:$0x3] }
  0x5b   :  { %832 = vmatpush.bf16.msra.mxu1 %v2605_v42  ;;  %v2717_v8 = vor.u32 %v3511_v3, %v2714_v5  ;;  %v3529_v12 = vld [vmem:[%s5399_s3] sm:$0xff]  ;;  %v154_v14 = vperm.slane %v152_v10, 0  ;;  %v3544_v22 = vld [vmem:[%s5399_s3 + $0x78] sm:$0xff]  ;;  %v3543_v27 = vld [vmem:[%s5399_s3 + $0x70] sm:$0xff]  ;;  %v155_v57 = vperm.slane %v152_v10, 1 }
  0x5c   :  { %819 = vmatpush.bf16.msra.mxu0 %v2533_v46  ;;  %v3542_v33 = vld [vmem:[%s5399_s3 + $0x68] sm:$0xff]  ;;  %v3541_v38 = vld [vmem:[%s5399_s3 + $0x60] sm:$0xff]  ;;  %v3540_v45 = vld [vmem:[%s5399_s3 + $0x58] sm:$0xff] }
  0x5d   :  { %860 = vmatpush.bf16.msrb.mxu2 %v2733_v43  ;;  %v3539_v50 = vld [vmem:[%s5399_s3 + $0x50] sm:$0xff]  ;;  %v3538_v53 = vld [vmem:[%s5399_s3 + $0x48] sm:$0xff]  ;;  %v3537_v56 = vld [vmem:[%s5399_s3 + $0x40] sm:$0xff] }
  0x5e   :  { %847 = vmatpush.bf16.msra.mxu3 %v2661_v51 }
  0x5f   :  { %833 = vmatpush.bf16.msra.mxu1 %v2597_v59 }
  0x60   :  { %820 = vmatpush.bf16.msra.mxu0 %v2525_v62 }
  0x61   :  { %861 = vmatpush.bf16.msrb.mxu2 %v2725_v61 }
  0x62   :  { %848 = vmatpush.bf16.msra.mxu3 %v2653_v2 }
  0x63   :  { %834 = vmatpush.bf16.msra.mxu1 %v2589_v7  ;;  %821 = vmatmul.bf16.vlgmr.msra.gmra.mxu0 %v4071_v54  ;;  %v3534_v54 = vld [vmem:[%s5399_s3 + $0x28] sm:$0xff] }
  0x64   :  { %876 = vmatpush.bf16.msrb.mxu0 %v2781_v6 }
  0x65   :  { %849 = vmatmul.bf16.vlgmr.msra.gmra.mxu3 %v4300_v37  ;;  %862 = vmatpush.bf16.msrb.mxu2 %v2717_v8  ;;  %v3531_v37 = vld [vmem:[%s5399_s3 + $0x10] sm:$0xff] }
  0x66   :  { %835 = vmatmul.bf16.vlgmr.msra.gmra.mxu1 %v4090_v63  ;;  %v3533_v63 = vld [vmem:[%s5399_s3 + $0x20] sm:$0xff]  ;;  %1035 = vmatpush.bf16.msrb.mxu3 %v3544_v22 }
  0x67   :  { %1021 = vmatpush.bf16.msrb.mxu1 %v3536_v9  ;;  %v3549_v22 = vld [vmem:[%s5401_s5 + $0x20] sm:$0xff] }
  0x68   :  { %863 = vmatmul.bf16.vlgmr.msrb.gmra.mxu2 %v4311_v44  ;;  %v3530_v44 = vld [vmem:[%s5399_s3 + $0x8] sm:$0xff] }
  0x6a   :  { %1036 = vmatpush.bf16.msrb.mxu3 %v3543_v27  ;;  %v3560_v27 = vld [vmem:[%s5403_s7 + $0x38] sm:$0xff] }
  0x6b   :  { %1022 = vmatpush.bf16.msrb.mxu1 %v3535_v4  ;;  %1205 = vmatpush.bf16.msra.mxu2 %v3560_v27  ;;  %v2922_v27 = vld [vmem:[%s5405_s9 + $0x10] sm:$0xf] }
  0x6e   :  { %1037 = vmatpush.bf16.msrb.mxu3 %v3542_v33  ;;  %v3692_v33 = vld [vmem:[%s5400_s4] ss:$0 sm:$0xff] }
  0x6f   :  { %1023 = vmatpush.bf16.msrb.mxu1 %v3534_v54 }
  0x72   :  { %1038 = vmatpush.bf16.msrb.mxu3 %v3541_v38 }
  0x73   :  { %2783 = vmatmul.msk.bf16.vlgmr.msrb.gmra.mxu0 %vm683_vm0, %v4194_v48  ;;  %1024 = vmatpush.bf16.msrb.mxu1 %v3533_v63  ;;  %v3532_v48 = vld [vmem:[%s5399_s3 + $0x18] sm:$0xff]  ;;  %s2350_s3 = sshll.u32 %s5409_s13, 4  ;;  %s2351_s3 = int_to_ptr.hbm [resolvable:$true] %s2350_s3 }
  0x76   :  { %1039 = vmatpush.bf16.msrb.mxu3 %v3540_v45  ;;  %v3556_v45 = vld [vmem:[%s5403_s7 + $0x18] sm:$0xff] }
  0x77   :  { %1025 = vmatpush.bf16.msrb.mxu1 %v3532_v48 }
  0x7a   :  { %1040 = vmatpush.bf16.msrb.mxu3 %v3539_v50  ;;  %v2970_v50 = vld [vmem:[%s5405_s9 + $0x70] sm:$0xf] }
  0x7b   :  { %1026 = vmatpush.bf16.msrb.mxu1 %v3531_v37 }
  0x7e   :  { %1041 = vmatpush.bf16.msrb.mxu3 %v3538_v53 }
  0x7f   :  { %1027 = vmatpush.bf16.msrb.mxu1 %v3530_v44 }
  0x82   :  { %1042 = vmatpush.bf16.msrb.mxu3 %v3537_v56  ;;  %v2962_v56 = vld [vmem:[%s5405_s9 + $0x60] sm:$0xf] }
  0x83   :  { %1028 = vmatpush.bf16.msrb.mxu1 %v3529_v12 }
  0xa0   :  { %v696_v60 = vpop.f32.mrf.mxu0 }
  0xa1   :  { %v697_v15 = vadd.f32 %v696_v60, %v154_v14 }
  0xa3   :  { %v710_v13 = vpop.f32.mrf.mxu1 }
  0xa4   :  { %v711_v18 = vadd.f32 %v710_v13, %v697_v15 }
  0xa7   :  { %v724_v11 = vpop.f32.mrf.mxu2 }
  0xa8   :  { %v698_v16 = vpop.f32.mrf.mxu0  ;;  %v738_v19 = vpop.f32.mrf.mxu3  ;;  %v725_v23 = vadd.f32 %v724_v11, %v711_v18 }
  0xa9   :  { %v699_v21 = vadd.f32 %v698_v16, %v154_v14 }
  0xaa   :  { %v739_v28 = vadd.f32 %v738_v19, %v725_v23  ;;  %v3552_v19 = vld [vmem:[%s5401_s5 + $0x38] sm:$0xff] }
  0xab   :  { %v712_v20 = vpop.f32.mrf.mxu1  ;;  %1120 = vmatpush.bf16.msra.mxu0 %v3552_v19  ;;  %v3548_v23 = vld [vmem:[%s5401_s5 + $0x18] sm:$0xff] }
  0xac   :  { %v713_v24 = vadd.f32 %v712_v20, %v699_v21  ;;  %v3551_v20 = vld [vmem:[%s5401_s5 + $0x30] sm:$0xff]  ;;  %v3550_v21 = vld [vmem:[%s5401_s5 + $0x28] sm:$0xff]  ;;  %v2940_v19 = vld [vmem:[%s5405_s9 + $0x38] sm:$0xf0] }
  0xaf   :  { %v726_v17 = vpop.f32.mrf.mxu2  ;;  %1121 = vmatpush.bf16.msra.mxu0 %v3551_v20 }
  0xb0   :  { %v727_v30 = vadd.f32 %v726_v17, %v713_v24  ;;  %v740_v32 = vpop.f32.mrf.mxu3  ;;  %v3547_v24 = vld [vmem:[%s5401_s5 + $0x10] sm:$0xff] }
  0xb2   :  { %v741_v34 = vadd.f32 %v740_v32, %v727_v30  ;;  %v3557_v30 = vld [vmem:[%s5403_s7 + $0x20] sm:$0xff] }
  0xb3   :  { %1122 = vmatpush.bf16.msra.mxu0 %v3550_v21  ;;  %v2930_v21 = vld [vmem:[%s5405_s9 + $0x20] sm:$0xf] }
  0xb7   :  { %v780_v26 = vpop.f32.mrf.mxu2  ;;  %1123 = vmatpush.bf16.msra.mxu0 %v3549_v22  ;;  %v3566_v22 = vld [vmem:[%s5405_s9 + $0x24] sm:$0xf0] }
  0xbb   :  { %1124 = vmatpush.bf16.msra.mxu0 %v3548_v23  ;;  %v3565_v23 = vld [vmem:[%s5405_s9 + $0x24] sm:$0xf] }
  0xbf   :  { %v782_v41 = vpop.f32.mrf.mxu2  ;;  %1125 = vmatpush.bf16.msra.mxu0 %v3547_v24  ;;  %v2931_v24 = vor.u32 %v3566_v22, %v2930_v21  ;;  %v3062_v21 = vld [vmem:[%s5407_s11 + $0xa8] sm:$0xf]  ;;  %v3601_v22 = vld [vmem:[%s5407_s11 + $0xc0] sm:$0xf0] }
  0xc0   :  { %v752_v25 = vpop.f32.mrf.mxu0 }
  0xc1   :  { %v753_v31 = vadd.f32 %v752_v25, %v739_v28  ;;  %v3546_v25 = vld [vmem:[%s5401_s5 + $0x8] sm:$0xff]  ;;  %v3559_v28 = vld [vmem:[%s5403_s7 + $0x30] sm:$0xff] }
  0xc2   :  { %1206 = vmatpush.bf16.msra.mxu2 %v3559_v28  ;;  %v3564_v28 = vld [vmem:[%s5405_s9 + $0x14] sm:$0xf0] }
  0xc3   :  { %v766_v29 = vpop.f32.mrf.mxu1  ;;  %1126 = vmatpush.bf16.msra.mxu0 %v3546_v25  ;;  %v2932_v25 = vld [vmem:[%s5405_s9 + $0x28] sm:$0xf0] }
  0xc4   :  { %v767_v35 = vadd.f32 %v766_v29, %v753_v31  ;;  %v3558_v29 = vld [vmem:[%s5403_s7 + $0x28] sm:$0xff] }
  0xc6   :  { %v781_v42 = vadd.f32 %v780_v26, %v767_v35  ;;  %v3545_v26 = vld [vmem:[%s5401_s5] sm:$0xff]  ;;  %1207 = vmatpush.bf16.msra.mxu2 %v3558_v29  ;;  %v3563_v29 = vld [vmem:[%s5405_s9 + $0x14] sm:$0xf] }
  0xc7   :  { %1127 = vmatpush.bf16.msra.mxu0 %v3545_v26  ;;  %v2935_v26 = vor.u32 %v3565_v23, %v2932_v25  ;;  %v3598_v23 = vld [vmem:[%s5407_s11 + $0xac] sm:$0xf] }
  0xc8   :  { %v754_v36 = vpop.f32.mrf.mxu0  ;;  %v883_v47 = vmax.f32 %v781_v42, 0.0  ;;  %v794_v52 = vpop.f32.mrf.mxu3 }
  0xc9   :  { %v755_v39 = vadd.f32 %v754_v36, %v741_v34  ;;  %v795_v62 = vadd.f32 %v794_v52, %v155_v57  ;;  %v3575_v52 = vld [vmem:[%s5405_s9 + $0x74] sm:$0xf] }
  0xca   :  { %1208 = vmatpush.bf16.msra.mxu2 %v3557_v30  ;;  %v2923_v30 = vor.u32 %v3564_v28, %v2922_v27  ;;  %v3286_v27 = vld [vmem:[%s5407_s11 + $0x268] sm:$0xf]  ;;  %v3063_v28 = vor.u32 %v3601_v22, %v3062_v21 }
  0xcb   :  { %v768_v40 = vpop.f32.mrf.mxu1  ;;  %v808_v55 = vpop.f32.mrf.mxu2 }
  0xcc   :  { %v769_v43 = vadd.f32 %v768_v40, %v755_v39  ;;  %v809_v1 = vadd.f32 %v808_v55, %v795_v62  ;;  %v2972_v55 = vld [vmem:[%s5405_s9 + $0x78] sm:$0xf0] }
  0xce   :  { %v783_v46 = vadd.f32 %v782_v41, %v769_v43  ;;  %1209 = vmatpush.bf16.msra.mxu2 %v3556_v45  ;;  %v3176_v45 = vld [vmem:[%s5407_s11 + $0x1a4] sm:$0xf0] }
  0xd0   :  { %v885_v49 = vmax.f32 %v783_v46, 0.0  ;;  %v796_v58 = vpop.f32.mrf.mxu3  ;;  %v3555_v46 = vld [vmem:[%s5403_s7 + $0x10] sm:$0xff] }
  0xd1   :  { %v797_v2 = vadd.f32 %v796_v58, %v155_v57  ;;  %v3574_v57 = vld [vmem:[%s5405_s9 + $0x64] sm:$0xf0]  ;;  %v2975_v58 = vor.u32 %v3575_v52, %v2972_v55  ;;  %v3685_v55 = vld [vmem:[%s5407_s11 + $0x360] sm:$0xf0] }
  0xd2   :  { %v887_v51 = vpack.c.bf16 %v885_v49, %v883_v47  ;;  %1210 = vmatpush.bf16.msra.mxu2 %v3555_v46  ;;  %v3554_v47 = vld [vmem:[%s5403_s7 + $0x8] sm:$0xff]  ;;  %v3553_v49 = vld [vmem:[%s5403_s7] sm:$0xff]  ;;  %v2963_v62 = vor.u32 %v3574_v57, %v2962_v56  ;;  %v3146_v46 = vld [vmem:[%s5407_s11 + $0x150] sm:$0xf] }
  0xd3   :  { %v810_v61 = vpop.f32.mrf.mxu2  ;;  %1338 = vmatpush.bf16.msra.mxu3 %v2975_v58  ;;  %v3398_v52 = vld [vmem:[%s5407_s11 + $0x348] sm:$0xf]  ;;  %v3682_v56 = vld [vmem:[%s5407_s11 + $0x34c] sm:$0xf] }
  0xd4   :  { %1029 = vmatmul.bf16.vlgmr.msrb.gmra.mxu1 %v887_v51  ;;  %v811_v7 = vadd.f32 %v810_v61, %v797_v2  ;;  %v3576_v51 = vld [vmem:[%s5405_s9 + $0x74] sm:$0xf0]  ;;  %v2964_v61 = vld [vmem:[%s5405_s9 + $0x68] sm:$0xf0]  ;;  %v3400_v57 = vld [vmem:[%s5407_s11 + $0x364] sm:$0xf0] }
  0xd5   :  { %v2971_v53 = vor.u32 %v3576_v51, %v2970_v50  ;;  %v3572_v2 = vld [vmem:[%s5405_s9 + $0x54] sm:$0xf0]  ;;  %v3619_v50 = vld [vmem:[%s5407_s11 + $0x154] sm:$0xf]  ;;  %v3148_v51 = vld [vmem:[%s5407_s11 + $0x16c] sm:$0xf0] }
  0xd6   :  { %1211 = vmatpush.bf16.msra.mxu2 %v3554_v47  ;;  %v3622_v47 = vld [vmem:[%s5407_s11 + $0x168] sm:$0xf0]  ;;  %v3151_v58 = vor.u32 %v3619_v50, %v3148_v51  ;;  %v3006_v50 = vld [vmem:[%s5407_s11 + $0x38] sm:$0xf]  ;;  %v3587_v51 = vld [vmem:[%s5407_s11 + $0x50] sm:$0xf0] }
  0xd7   :  { %1324 = vmatpush.bf16.msra.mxu1 %v2971_v53  ;;  %v3147_v53 = vor.u32 %v3622_v47, %v3146_v46  ;;  %v3260_v46 = vld [vmem:[%s5407_s11 + $0x24c] sm:$0xf0]  ;;  %v3694_v47 = vld [vmem:[%s5404_s8] ss:$0 sm:$0xff] }
  0xda   :  { %1212 = vmatpush.bf16.msra.mxu2 %v3553_v49 }
  0xdb   :  { %1325 = vmatpush.bf16.msra.mxu1 %v2963_v62  ;;  %v3118_v62 = vld [vmem:[%s5407_s11 + $0x118] sm:$0xf] }
  0xe0   :  { %v822_v59 = vpop.f32.mrf.mxu0 }
  0xe1   :  { %v823_v8 = vadd.f32 %v822_v59, %v809_v1  ;;  %v3573_v59 = vld [vmem:[%s5405_s9 + $0x64] sm:$0xf]  ;;  %v2954_v1 = vld [vmem:[%s5405_s9 + $0x50] sm:$0xf] }
  0xe3   :  { %v836_v0 = vpop.f32.mrf.mxu1 }
  0xe4   :  { %v837_v54 = vadd.f32 %v836_v0, %v823_v8  ;;  %v2967_v0 = vor.u32 %v3573_v59, %v2964_v61  ;;  %v2946_v8 = vld [vmem:[%s5405_s9 + $0x40] sm:$0xf]  ;;  %v3399_v59 = vor.u32 %v3685_v55, %v3398_v52  ;;  %v3403_v61 = vor.u32 %v3682_v56, %v3400_v57  ;;  %v3584_v52 = vld [vmem:[%s5407_s11 + $0x3c] sm:$0xf]  ;;  %v3230_v57 = vld [vmem:[%s5407_s11 + $0x1f8] sm:$0xf] }
  0xe6   :  { %1339 = vmatpush.bf16.msra.mxu3 %v2967_v0  ;;  %v3615_v0 = vld [vmem:[%s5407_s11 + $0x130] sm:$0xf0]  ;;  %2092 = vmatpush.bf16.msrb.mxu2 %v3399_v59 }
  0xe7   :  { %v3643_v59 = vld [vmem:[%s5407_s11 + $0x210] sm:$0xf0] }
  0xe8   :  { %v850_v3 = vpop.f32.mrf.mxu3  ;;  %v824_v5 = vpop.f32.mrf.mxu0 }
  0xe9   :  { %v825_v9 = vadd.f32 %v824_v5, %v811_v7  ;;  %v851_v37 = vadd.f32 %v850_v3, %v837_v54  ;;  %v3571_v3 = vld [vmem:[%s5405_s9 + $0x54] sm:$0xf]  ;;  %v2956_v5 = vld [vmem:[%s5405_s9 + $0x58] sm:$0xf0]  ;;  %v2948_v54 = vld [vmem:[%s5405_s9 + $0x48] sm:$0xf0] }
  0xea   :  { %v2959_v7 = vor.u32 %v3571_v3, %v2956_v5  ;;  %v3370_v3 = vld [vmem:[%s5407_s11 + $0x310] sm:$0xf]  ;;  %v3678_v5 = vld [vmem:[%s5407_s11 + $0x328] sm:$0xf0] }
  0xeb   :  { %v864_v6 = vpop.f32.mrf.mxu2  ;;  %v838_v4 = vpop.f32.mrf.mxu1 }
  0xec   :  { %v839_v44 = vadd.f32 %v838_v4, %v825_v9  ;;  %v865_v11 = vadd.f32 %v864_v6, %v851_v37  ;;  %v2955_v6 = vor.u32 %v3572_v2, %v2954_v1  ;;  %v3570_v9 = vld [vmem:[%s5405_s9 + $0x44] sm:$0xf0]  ;;  %v3569_v4 = vld [vmem:[%s5405_s9 + $0x44] sm:$0xf]  ;;  %1340 = vmatpush.bf16.msra.mxu3 %v2959_v7  ;;  %v3612_v1 = vld [vmem:[%s5407_s11 + $0x11c] sm:$0xf] }
  0xed   :  { %v3120_v2 = vld [vmem:[%s5407_s11 + $0x134] sm:$0xf0]  ;;  %v3675_v7 = vld [vmem:[%s5407_s11 + $0x314] sm:$0xf] }
  0xee   :  { %1326 = vmatpush.bf16.msra.mxu1 %v2955_v6  ;;  %v3371_v6 = vor.u32 %v3678_v5, %v3370_v3  ;;  %v3580_v3 = vld [vmem:[%s5407_s11 + $0x18] sm:$0xf0]  ;;  %v3577_v5 = vld [vmem:[%s5407_s11 + $0x4] sm:$0xf] }
  0xf0   :  { %v852_v63 = vpop.f32.mrf.mxu3  ;;  %v878_v48 = vpop.f32.mrf.mxu0  ;;  %2093 = vmatpush.bf16.msrb.mxu2 %v3371_v6 }
  0xf1   :  { %v853_v10 = vadd.f32 %v852_v63, %v839_v44  ;;  %v879_v12 = vadd.f32 %v878_v48, %v865_v11  ;;  %v2947_v63 = vor.u32 %v3570_v9, %v2946_v8  ;;  %v2951_v48 = vor.u32 %v3569_v4, %v2948_v54  ;;  %v3693_v44 = vld [vmem:[%s5402_s6] ss:$0 sm:$0xff]  ;;  %v3372_v8 = vld [vmem:[%s5407_s11 + $0x32c] sm:$0xf0] }
  0xf2   :  { %v3119_v9 = vor.u32 %v3615_v0, %v3118_v62  ;;  %v3375_v4 = vor.u32 %v3675_v7, %v3372_v8  ;;  %v3090_v54 = vld [vmem:[%s5407_s11 + $0xe0] sm:$0xf]  ;;  %v3232_v62 = vld [vmem:[%s5407_s11 + $0x214] sm:$0xf0]  ;;  %v3182_v8 = vld [vmem:[%s5407_s11 + $0x190] sm:$0xf] }
  0xf3   :  { %v866_v60 = vpop.f32.mrf.mxu2  ;;  %v884_v16 = vmax.f32 %v879_v12, 0.0  ;;  %1327 = vmatpush.bf16.msra.mxu1 %v2947_v63  ;;  %1341 = vmatpush.bf16.msra.mxu3 %v2951_v48  ;;  %v3608_v63 = vld [vmem:[%s5407_s11 + $0xf8] sm:$0xf0]  ;;  %v3123_v48 = vor.u32 %v3612_v1, %v3120_v2  ;;  %v2978_v2 = vld [vmem:[%s5407_s11] sm:$0xf] }
  0xf4   :  { %v867_v13 = vadd.f32 %v866_v60, %v853_v10  ;;  %v2980_v7 = vld [vmem:[%s5407_s11 + $0x1c] sm:$0xf0] }
  0xf8   :  { %v880_v14 = vpop.f32.mrf.mxu0 }
  0xf9   :  { %v881_v15 = vadd.f32 %v880_v14, %v867_v13 }
  0xfb   :  { %v886_v17 = vmax.f32 %v881_v15, 0.0  ;;  %v2938_v15 = vld [vmem:[%s5405_s9 + $0x30] sm:$0xf] }
  0xfd   :  { %v888_v18 = vpack.c.bf16 %v886_v17, %v884_v16  ;;  %v3568_v16 = vld [vmem:[%s5405_s9 + $0x34] sm:$0xf0]  ;;  %v3567_v17 = vld [vmem:[%s5405_s9 + $0x34] sm:$0xf] }
  0xfe   :  { %v2943_v20 = vor.u32 %v3567_v17, %v2940_v19  ;;  %v3664_v17 = vld [vmem:[%s5407_s11 + $0x2b8] sm:$0xf0]  ;;  %v3316_v19 = vld [vmem:[%s5407_s11 + $0x2bc] sm:$0xf0] }
  0xff   :  { %1043 = vmatmul.bf16.vlgmr.msrb.gmra.mxu3 %v888_v18  ;;  %v2939_v18 = vor.u32 %v3568_v16, %v2938_v15  ;;  %v3314_v15 = vld [vmem:[%s5407_s11 + $0x2a0] sm:$0xf]  ;;  %v3091_v16 = vor.u32 %v3608_v63, %v3090_v54  ;;  %v3231_v54 = vor.u32 %v3643_v59, %v3230_v57  ;;  %v3627_v63 = vld [vmem:[%s5407_s11 + $0x194] sm:$0xf] }
 0x100   :  { %1342 = vmatpush.bf16.msra.mxu3 %v2943_v20  ;;  %v3315_v25 = vor.u32 %v3664_v17, %v3314_v15  ;;  %v3406_v15 = vld [vmem:[%s5407_s11 + $0x350] sm:$0xf]  ;;  %v2983_v17 = vor.u32 %v3577_v5, %v2980_v7  ;;  %v3352_v59 = vld [vmem:[%s5407_s11 + $0x2fc] sm:$0xf0]  ;;  %v3665_v7 = vld [vmem:[%s5407_s11 + $0x2c0] sm:$0xf0] }
 0x101   :  { %1328 = vmatpush.bf16.msra.mxu1 %v2939_v18  ;;  %v3661_v18 = vld [vmem:[%s5407_s11 + $0x2a4] sm:$0xf] }
 0x104   :  { %1343 = vmatpush.bf16.msra.mxu3 %v2935_v26  ;;  %v3319_v26 = vor.u32 %v3661_v18, %v3316_v19  ;;  %v3683_v19 = vld [vmem:[%s5407_s11 + $0x354] sm:$0xf] }
 0x105   :  { %1329 = vmatpush.bf16.msra.mxu1 %v2931_v24  ;;  %v3064_v24 = vld [vmem:[%s5407_s11 + $0xc4] sm:$0xf0] }
 0x109   :  { %1330 = vmatpush.bf16.msra.mxu1 %v2923_v30  ;;  %v3654_v30 = vld [vmem:[%s5407_s11 + $0x26c] sm:$0xf] }
 0x151   :  { %v1030_v31 = vpop.f32.mrf.mxu1 }
 0x152   :  { %v1031_v35 = vadd.f32 %v3692_v33, %v1030_v31  ;;  %v2924_v31 = vld [vmem:[%s5405_s9 + $0x18] sm:$0xf0] }
 0x159   :  { %v1032_v34 = vpop.f32.mrf.mxu1 }
 0x15a   :  { %v1033_v36 = vadd.f32 %v3692_v33, %v1032_v34  ;;  %v2914_v33 = vld [vmem:[%s5405_s9] sm:$0xf]  ;;  %v3562_v34 = vld [vmem:[%s5405_s9 + $0x4] sm:$0xf0] }
 0x182   :  { %v1044_v32 = vpop.f32.mrf.mxu3 }
 0x183   :  { %v1045_v38 = vadd.f32 %v1044_v32, %v1031_v35  ;;  %v2927_v32 = vor.u32 %v3563_v29, %v2924_v31  ;;  %v3561_v35 = vld [vmem:[%s5405_s9 + $0x4] sm:$0xf]  ;;  %v3288_v31 = vld [vmem:[%s5407_s11 + $0x284] sm:$0xf0] }
 0x184   :  { %v3657_v29 = vld [vmem:[%s5407_s11 + $0x280] sm:$0xf0] }
 0x185   :  { %v1049_v41 = vmax.f32 %v1045_v38, 0.0  ;;  %1344 = vmatpush.bf16.msra.mxu3 %v2927_v32  ;;  %v2916_v38 = vld [vmem:[%s5405_s9 + $0x8] sm:$0xf0]  ;;  %v3067_v32 = vor.u32 %v3598_v23, %v3064_v24  ;;  %v3154_v23 = vld [vmem:[%s5407_s11 + $0x158] sm:$0xf] }
 0x186   :  { %v3623_v24 = vld [vmem:[%s5407_s11 + $0x170] sm:$0xf0] }
 0x18a   :  { %v1046_v39 = vpop.f32.mrf.mxu3 }
 0x18b   :  { %v1047_v40 = vadd.f32 %v1046_v39, %v1033_v36  ;;  %v2915_v36 = vor.u32 %v3562_v34, %v2914_v33  ;;  %v2919_v39 = vor.u32 %v3561_v35, %v2916_v38  ;;  %v3034_v33 = vld [vmem:[%s5407_s11 + $0x70] sm:$0xf]  ;;  %v3594_v34 = vld [vmem:[%s5407_s11 + $0x88] sm:$0xf0] }
 0x18c   :  { %v3036_v38 = vld [vmem:[%s5407_s11 + $0x8c] sm:$0xf0] }
 0x18d   :  { %v1050_v42 = vmax.f32 %v1047_v40, 0.0  ;;  %1331 = vmatpush.bf16.msra.mxu1 %v2915_v36  ;;  %1345 = vmatpush.bf16.msra.mxu3 %v2919_v39  ;;  %v3174_v40 = vld [vmem:[%s5407_s11 + $0x188] sm:$0xf]  ;;  %v3591_v36 = vld [vmem:[%s5407_s11 + $0x74] sm:$0xf]  ;;  %v3287_v39 = vor.u32 %v3657_v29, %v3286_v27 }
 0x18e   :  { %v3156_v27 = vld [vmem:[%s5407_s11 + $0x174] sm:$0xf0] }
 0x18f   :  { %v1051_v43 = vpack.c.bf16 %v1050_v42, %v1049_v41  ;;  %v3629_v41 = vld [vmem:[%s5407_s11 + $0x1a0] sm:$0xf0]  ;;  %v3626_v42 = vld [vmem:[%s5407_s11 + $0x18c] sm:$0xf] }
 0x190   :  { %v3179_v49 = vor.u32 %v3626_v42, %v3176_v45  ;;  %v3035_v42 = vor.u32 %v3594_v34, %v3034_v33  ;;  %v3647_v45 = vld [vmem:[%s5407_s11 + $0x234] sm:$0xf]  ;;  %v3155_v33 = vor.u32 %v3623_v24, %v3154_v23  ;;  %v3676_v34 = vld [vmem:[%s5407_s11 + $0x31c] sm:$0xf]  ;;  %v3266_v23 = vld [vmem:[%s5407_s11 + $0x238] sm:$0xf] }
 0x191   :  { %1128 = vmatmul.bf16.vlgmr.msra.gmra.mxu0 %v1051_v43  ;;  %v3175_v43 = vor.u32 %v3629_v41, %v3174_v40  ;;  %2120 = vmatpush.bf16.msrb.mxu3 %v3403_v61  ;;  %v3291_v40 = vor.u32 %v3654_v30, %v3288_v31  ;;  %v3258_v41 = vld [vmem:[%s5407_s11 + $0x230] sm:$0xf]  ;;  %v3263_v56 = vor.u32 %v3647_v45, %v3260_v46  ;;  %v3640_v61 = vld [vmem:[%s5407_s11 + $0x1fc] sm:$0xf]  ;;  %v3378_v31 = vld [vmem:[%s5407_s11 + $0x318] sm:$0xf] }
 0x192   :  { %2106 = vmatpush.bf16.msrb.mxu1 %v3179_v49  ;;  %v3039_v49 = vor.u32 %v3591_v36, %v3036_v38  ;;  %v3126_v38 = vld [vmem:[%s5407_s11 + $0x120] sm:$0xf]  ;;  %v3651_v24 = vld [vmem:[%s5407_s11 + $0x250] sm:$0xf0] }
 0x193   :  { %2078 = vmatpush.bf16.msrb.mxu0 %v3175_v43  ;;  %v3650_v43 = vld [vmem:[%s5407_s11 + $0x248] sm:$0xf0] }
 0x194   :  { %v3259_v55 = vor.u32 %v3650_v43, %v3258_v41  ;;  %v3128_v41 = vld [vmem:[%s5407_s11 + $0x13c] sm:$0xf0] }
 0x195   :  { %2121 = vmatpush.bf16.msrb.mxu3 %v3375_v4 }
 0x196   :  { %2107 = vmatpush.bf16.msrb.mxu1 %v3151_v58  ;;  %v3007_v58 = vor.u32 %v3587_v51, %v3006_v50  ;;  %v3606_v50 = vld [vmem:[%s5407_s11 + $0xec] sm:$0xf]  ;;  %v3100_v51 = vld [vmem:[%s5407_s11 + $0x104] sm:$0xf0] }
 0x197   :  { %2079 = vmatpush.bf16.msrb.mxu0 %v3147_v53  ;;  %v3008_v53 = vld [vmem:[%s5407_s11 + $0x54] sm:$0xf0] }
 0x198   :  { %v3011_v1 = vor.u32 %v3584_v52, %v3008_v53  ;;  %v3103_v53 = vor.u32 %v3606_v50, %v3100_v51  ;;  %v1238_v50 = vld [vmem:[%s5406_s10] sm:$0x3] }
 0x19a   :  { %2108 = vmatpush.bf16.msrb.mxu1 %v3123_v48  ;;  %v3184_v48 = vld [vmem:[%s5407_s11 + $0x1ac] sm:$0xf0] }
 0x19b   :  { %2080 = vmatpush.bf16.msrb.mxu0 %v3119_v9  ;;  %v3630_v9 = vld [vmem:[%s5407_s11 + $0x1a8] sm:$0xf0]  ;;  %v3187_v22 = vor.u32 %v3627_v63, %v3184_v48  ;;  %v3042_v63 = vld [vmem:[%s5407_s11 + $0x78] sm:$0xf]  ;;  %v3595_v48 = vld [vmem:[%s5407_s11 + $0x90] sm:$0xf0] }
 0x19c   :  { %v3183_v18 = vor.u32 %v3630_v9, %v3182_v8  ;;  %v3662_v9 = vld [vmem:[%s5407_s11 + $0x2ac] sm:$0xf] }
 0x19f   :  { %2081 = vmatpush.bf16.msrb.mxu0 %v3091_v16  ;;  %v3686_v16 = vld [vmem:[%s5407_s11 + $0x368] sm:$0xf0] }
 0x1a0   :  { %v3407_v29 = vor.u32 %v3686_v16, %v3406_v15  ;;  %v3296_v15 = vld [vmem:[%s5407_s11 + $0x28c] sm:$0xf0] }
 0x1a3   :  { %2082 = vmatpush.bf16.msrb.mxu0 %v3063_v28 }
 0x1a7   :  { %2083 = vmatpush.bf16.msrb.mxu0 %v3035_v42 }
 0x1ab   :  { %2084 = vmatpush.bf16.msrb.mxu0 %v3007_v58  ;;  %v3669_v58 = vld [vmem:[%s5407_s11 + $0x2e4] sm:$0xf] }
 0x20e   :  { %v1129_v37 = vpop.f32.mrf.mxu0 }
 0x20f   :  { %v1130_v10 = vadd.f32 %v3693_v44, %v1129_v37  ;;  %v3342_v37 = vld [vmem:[%s5407_s11 + $0x2d8] sm:$0xf] }
 0x211   :  { %v1134_v12 = vmax.f32 %v1130_v10, 0.0  ;;  %v3668_v10 = vld [vmem:[%s5407_s11 + $0x2dc] sm:$0xf] }
 0x216   :  { %v1131_v60 = vpop.f32.mrf.mxu0 }
 0x217   :  { %v1132_v11 = vadd.f32 %v3693_v44, %v1131_v60  ;;  %v3671_v44 = vld [vmem:[%s5407_s11 + $0x2f0] sm:$0xf0]  ;;  %v3605_v60 = vld [vmem:[%s5407_s11 + $0xe4] sm:$0xf] }
 0x219   :  { %v1135_v13 = vmax.f32 %v1132_v11, 0.0  ;;  %v3092_v11 = vld [vmem:[%s5407_s11 + $0xfc] sm:$0xf0] }
 0x21a   :  { %v3095_v20 = vor.u32 %v3605_v60, %v3092_v11  ;;  %v3636_v60 = vld [vmem:[%s5407_s11 + $0x1d8] sm:$0xf0]  ;;  %v3633_v11 = vld [vmem:[%s5407_s11 + $0x1c4] sm:$0xf] }
 0x21b   :  { %v1136_v14 = vpack.c.bf16 %v1135_v13, %v1134_v12  ;;  %v3344_v12 = vld [vmem:[%s5407_s11 + $0x2f4] sm:$0xf0]  ;;  %v3343_v13 = vor.u32 %v3671_v44, %v3342_v37  ;;  %v3235_v37 = vor.u32 %v3640_v61, %v3232_v62  ;;  %v3202_v44 = vld [vmem:[%s5407_s11 + $0x1c0] sm:$0xf]  ;;  %v3355_v61 = vor.u32 %v3669_v58, %v3352_v59  ;;  %v3070_v62 = vld [vmem:[%s5407_s11 + $0xb0] sm:$0xf] }
 0x21c   :  { %2109 = vmatpush.bf16.msrb.mxu1 %v3095_v20  ;;  %v3408_v20 = vld [vmem:[%s5407_s11 + $0x36c] sm:$0xf0]  ;;  %v3190_v58 = vld [vmem:[%s5407_s11 + $0x198] sm:$0xf] }
 0x21d   :  { %1213 = vmatmul.bf16.vlgmr.msra.gmra.mxu2 %v1136_v14  ;;  %v3347_v14 = vor.u32 %v3668_v10, %v3344_v12  ;;  %v2979_v10 = vor.u32 %v3580_v3, %v2978_v2  ;;  %v3204_v12 = vld [vmem:[%s5407_s11 + $0x1dc] sm:$0xf0]  ;;  %v3411_v30 = vor.u32 %v3683_v19, %v3408_v20  ;;  %v3599_v2 = vld [vmem:[%s5407_s11 + $0xb4] sm:$0xf]  ;;  %v3072_v3 = vld [vmem:[%s5407_s11 + $0xcc] sm:$0xf0] }
 0x21e   :  { %2094 = vmatpush.bf16.msrb.mxu2 %v3343_v13  ;;  %v3207_v28 = vor.u32 %v3633_v11, %v3204_v12  ;;  %v3075_v5 = vor.u32 %v3599_v2, %v3072_v3  ;;  %v3294_v11 = vld [vmem:[%s5407_s11 + $0x270] sm:$0xf]  ;;  %v3658_v12 = vld [vmem:[%s5407_s11 + $0x288] sm:$0xf0]  ;;  %v3585_v20 = vld [vmem:[%s5407_s11 + $0x44] sm:$0xf] }
 0x21f   :  { %2122 = vmatpush.bf16.msrb.mxu3 %v3347_v14  ;;  %2085 = vmatpush.bf16.msrb.mxu0 %v2979_v10  ;;  %v3044_v10 = vld [vmem:[%s5407_s11 + $0x94] sm:$0xf0] }
 0x220   :  { %2110 = vmatpush.bf16.msrb.mxu1 %v3067_v32  ;;  %v3679_v32 = vld [vmem:[%s5407_s11 + $0x330] sm:$0xf0] }
 0x221   :  { %v3379_v42 = vor.u32 %v3679_v32, %v3378_v31  ;;  %v3578_v32 = vld [vmem:[%s5407_s11 + $0xc] sm:$0xf] }
 0x222   :  { %2095 = vmatpush.bf16.msrb.mxu2 %v3315_v25  ;;  %v3203_v25 = vor.u32 %v3636_v60, %v3202_v44  ;;  %v3592_v44 = vld [vmem:[%s5407_s11 + $0x7c] sm:$0xf] }
 0x223   :  { %2123 = vmatpush.bf16.msrb.mxu3 %v3319_v26  ;;  %v3620_v26 = vld [vmem:[%s5407_s11 + $0x15c] sm:$0xf]  ;;  %2134 = vmatpush.bf16.msra.mxu0 %v3183_v18  ;;  %v3047_v60 = vor.u32 %v3592_v44, %v3044_v10  ;;  %v3687_v44 = vld [vmem:[%s5407_s11 + $0x370] sm:$0xf0] }
 0x224   :  { %2111 = vmatpush.bf16.msrb.mxu1 %v3039_v49  ;;  %v3159_v36 = vor.u32 %v3620_v26, %v3156_v27  ;;  %v3609_v49 = vld [vmem:[%s5407_s11 + $0x100] sm:$0xf0]  ;;  %v3588_v18 = vld [vmem:[%s5407_s11 + $0x58] sm:$0xf0]  ;;  %v3268_v27 = vld [vmem:[%s5407_s11 + $0x254] sm:$0xf0] }
 0x225   :  { %v3648_v26 = vld [vmem:[%s5407_s11 + $0x23c] sm:$0xf] }
 0x226   :  { %2096 = vmatpush.bf16.msrb.mxu2 %v3287_v39  ;;  %v3616_v39 = vld [vmem:[%s5407_s11 + $0x138] sm:$0xf0] }
 0x227   :  { %2124 = vmatpush.bf16.msrb.mxu3 %v3291_v40  ;;  %v3613_v40 = vld [vmem:[%s5407_s11 + $0x124] sm:$0xf]  ;;  %2135 = vmatpush.bf16.msra.mxu0 %v3155_v33  ;;  %v3127_v45 = vor.u32 %v3616_v39, %v3126_v38  ;;  %v2988_v33 = vld [vmem:[%s5407_s11 + $0x24] sm:$0xf0]  ;;  %v3684_v10 = vld [vmem:[%s5407_s11 + $0x35c] sm:$0xf] }
 0x228   :  { %2112 = vmatpush.bf16.msrb.mxu1 %v3011_v1  ;;  %v3131_v46 = vor.u32 %v3613_v40, %v3128_v41  ;;  %v3641_v39 = vld [vmem:[%s5407_s11 + $0x204] sm:$0xf]  ;;  %v3240_v40 = vld [vmem:[%s5407_s11 + $0x21c] sm:$0xf0] }
 0x229   :  { %v3243_v41 = vor.u32 %v3641_v39, %v3240_v40 }
 0x22a   :  { %2097 = vmatpush.bf16.msrb.mxu2 %v3259_v55  ;;  %v3350_v55 = vld [vmem:[%s5407_s11 + $0x2e0] sm:$0xf] }
 0x22b   :  { %2125 = vmatpush.bf16.msrb.mxu3 %v3263_v56  ;;  %2136 = vmatpush.bf16.msra.mxu0 %v3127_v45  ;;  %v3672_v56 = vld [vmem:[%s5407_s11 + $0x2f8] sm:$0xf0] }
 0x22c   :  { %2113 = vmatpush.bf16.msrb.mxu1 %v2983_v17  ;;  %v3351_v57 = vor.u32 %v3672_v56, %v3350_v55  ;;  %v3014_v17 = vld [vmem:[%s5407_s11 + $0x40] sm:$0xf]  ;;  %v1241_v56 = vperm.slane %v1238_v50, 1 }
 0x22d   :  { %v3015_v19 = vor.u32 %v3588_v18, %v3014_v17  ;;  %v3614_v17 = vld [vmem:[%s5407_s11 + $0x12c] sm:$0xf]  ;;  %v3136_v18 = vld [vmem:[%s5407_s11 + $0x144] sm:$0xf0] }
 0x22e   :  { %2098 = vmatpush.bf16.msrb.mxu2 %v3231_v54 }
 0x22f   :  { %2126 = vmatpush.bf16.msrb.mxu3 %v3235_v37  ;;  %v3043_v37 = vor.u32 %v3595_v48, %v3042_v63  ;;  %v3414_v48 = vld [vmem:[%s5407_s11 + $0x358] sm:$0xf] }
 0x232   :  { %2099 = vmatpush.bf16.msrb.mxu2 %v3203_v25  ;;  %v3267_v25 = vor.u32 %v3651_v24, %v3266_v23  ;;  %v3680_v23 = vld [vmem:[%s5407_s11 + $0x338] sm:$0xf0]  ;;  %v3677_v24 = vld [vmem:[%s5407_s11 + $0x324] sm:$0xf] }
 0x233   :  { %2127 = vmatpush.bf16.msrb.mxu3 %v3207_v28  ;;  %v3271_v28 = vor.u32 %v3648_v26, %v3268_v27  ;;  %v3139_v27 = vor.u32 %v3614_v17, %v3136_v18 }
 0x236   :  { %2148 = vmatpush.bf16.msra.mxu2 %v3407_v29  ;;  %v2986_v29 = vld [vmem:[%s5407_s11 + $0x8] sm:$0xf] }
 0x23a   :  { %2149 = vmatpush.bf16.msra.mxu2 %v3379_v42  ;;  %v3210_v42 = vld [vmem:[%s5407_s11 + $0x1c8] sm:$0xf] }
 0x23e   :  { %2150 = vmatpush.bf16.msra.mxu2 %v3351_v57 }
 0x2a0   :  { %v1214_v35 = vpop.f32.mrf.mxu2 }
 0x2a1   :  { %v1215_v0 = vadd.f32 %v3694_v47, %v1214_v35  ;;  %v3380_v35 = vld [vmem:[%s5407_s11 + $0x334] sm:$0xf0] }
 0x2a2   :  { %v3383_v43 = vor.u32 %v3676_v34, %v3380_v35  ;;  %v2991_v34 = vor.u32 %v3578_v32, %v2988_v33  ;;  %v3238_v35 = vld [vmem:[%s5407_s11 + $0x200] sm:$0xf] }
 0x2a3   :  { %v1219_v13 = vmax.f32 %v1215_v0, 0.0  ;;  %v3602_v0 = vld [vmem:[%s5407_s11 + $0xc8] sm:$0xf0] }
 0x2a4   :  { %v3071_v1 = vor.u32 %v3602_v0, %v3070_v62  ;;  %v3628_v62 = vld [vmem:[%s5407_s11 + $0x19c] sm:$0xf]  ;;  %v3192_v0 = vld [vmem:[%s5407_s11 + $0x1b4] sm:$0xf0] }
 0x2a8   :  { %v1216_v6 = vpop.f32.mrf.mxu2 }
 0x2a9   :  { %v1217_v4 = vadd.f32 %v3694_v47, %v1216_v6  ;;  %v3098_v47 = vld [vmem:[%s5407_s11 + $0xe8] sm:$0xf] }
 0x2aa   :  { %v3099_v52 = vor.u32 %v3609_v49, %v3098_v47  ;;  %v3322_v6 = vld [vmem:[%s5407_s11 + $0x2a8] sm:$0xf] }
 0x2ab   :  { %v1220_v14 = vmax.f32 %v1217_v4, 0.0  ;;  %v3323_v8 = vor.u32 %v3665_v7, %v3322_v6  ;;  %v3324_v4 = vld [vmem:[%s5407_s11 + $0x2c4] sm:$0xf0]  ;;  %v3162_v6 = vld [vmem:[%s5407_s11 + $0x160] sm:$0xf] }
 0x2ac   :  { %2137 = vmatpush.bf16.msra.mxu0 %v3099_v52  ;;  %v3327_v54 = vor.u32 %v3662_v9, %v3324_v4  ;;  %v3212_v47 = vld [vmem:[%s5407_s11 + $0x1e4] sm:$0xf0]  ;;  %v1240_v52 = vperm.slane %v1238_v50, 0  ;;  %v3624_v9 = vld [vmem:[%s5407_s11 + $0x178] sm:$0xf0] }
 0x2ad   :  { %v1221_v21 = vpack.c.bf16 %v1220_v14, %v1219_v13  ;;  %2151 = vmatpush.bf16.msra.mxu2 %v3323_v8  ;;  %v3295_v13 = vor.u32 %v3658_v12, %v3294_v11  ;;  %v3655_v14 = vld [vmem:[%s5407_s11 + $0x274] sm:$0xf]  ;;  %v3621_v4 = vld [vmem:[%s5407_s11 + $0x164] sm:$0xf]  ;;  %v3163_v11 = vor.u32 %v3624_v9, %v3162_v6  ;;  %v3666_v50 = vld [vmem:[%s5407_s11 + $0x2c8] sm:$0xf0] }
 0x2ae   :  { %v3299_v16 = vor.u32 %v3655_v14, %v3296_v15  ;;  %v3617_v14 = vld [vmem:[%s5407_s11 + $0x140] sm:$0xf0] }
 0x2af   :  { %1332 = vmatmul.bf16.vlgmr.msra.gmra.mxu1 %v1221_v21  ;;  %1346 = vmatmul.bf16.vlgmr.msra.gmra.mxu3 %v1221_v21  ;;  %v3016_v21 = vld [vmem:[%s5407_s11 + $0x5c] sm:$0xf0]  ;;  %v3589_v9 = vld [vmem:[%s5407_s11 + $0x60] sm:$0xf0] }
 0x2b0   :  { %2162 = vmatpush.bf16.msra.mxu1 %v3187_v22  ;;  %2176 = vmatpush.bf16.msra.mxu3 %v3411_v30  ;;  %v3019_v22 = vor.u32 %v3585_v20, %v3016_v21  ;;  %v3581_v30 = vld [vmem:[%s5407_s11 + $0x20] sm:$0xf0]  ;;  %v3386_v21 = vld [vmem:[%s5407_s11 + $0x320] sm:$0xf] }
 0x2b1   :  { %2138 = vmatpush.bf16.msra.mxu0 %v3071_v1  ;;  %2152 = vmatpush.bf16.msra.mxu2 %v3295_v13  ;;  %v2987_v31 = vor.u32 %v3581_v30, %v2986_v29  ;;  %v3134_v13 = vld [vmem:[%s5407_s11 + $0x128] sm:$0xf]  ;;  %v3610_v29 = vld [vmem:[%s5407_s11 + $0x108] sm:$0xf0]  ;;  %v3607_v30 = vld [vmem:[%s5407_s11 + $0xf4] sm:$0xf]  ;;  %v3387_v32 = vor.u32 %v3680_v23, %v3386_v21 }
 0x2b2   :  { %v3135_v26 = vor.u32 %v3617_v14, %v3134_v13  ;;  %v2994_v13 = vld [vmem:[%s5407_s11 + $0x10] sm:$0xf]  ;;  %v3582_v14 = vld [vmem:[%s5407_s11 + $0x28] sm:$0xf0]  ;;  %v3246_v21 = vld [vmem:[%s5407_s11 + $0x208] sm:$0xf] }
 0x2b3   :  { %v3645_v23 = vld [vmem:[%s5407_s11 + $0x220] sm:$0xf0] }
 0x2b4   :  { %2163 = vmatpush.bf16.msra.mxu1 %v3159_v36  ;;  %2177 = vmatpush.bf16.msra.mxu3 %v3383_v43  ;;  %v3644_v36 = vld [vmem:[%s5407_s11 + $0x218] sm:$0xf0]  ;;  %v3637_v43 = vld [vmem:[%s5407_s11 + $0x1e0] sm:$0xf0] }
 0x2b5   :  { %2139 = vmatpush.bf16.msra.mxu0 %v3043_v37  ;;  %2153 = vmatpush.bf16.msra.mxu2 %v3267_v25  ;;  %v3239_v38 = vor.u32 %v3644_v36, %v3238_v35  ;;  %v3211_v45 = vor.u32 %v3637_v43, %v3210_v42  ;;  %v3388_v25 = vld [vmem:[%s5407_s11 + $0x33c] sm:$0xf0]  ;;  %v3673_v35 = vld [vmem:[%s5407_s11 + $0x300] sm:$0xf0]  ;;  %v3670_v36 = vld [vmem:[%s5407_s11 + $0x2ec] sm:$0xf] }
 0x2b6   :  { %v3391_v33 = vor.u32 %v3677_v24, %v3388_v25  ;;  %v3603_v42 = vld [vmem:[%s5407_s11 + $0xd0] sm:$0xf0]  ;;  %v3600_v43 = vld [vmem:[%s5407_s11 + $0xbc] sm:$0xf]  ;;  %v3642_v24 = vld [vmem:[%s5407_s11 + $0x20c] sm:$0xf] }
 0x2b7   :  { %v3248_v25 = vld [vmem:[%s5407_s11 + $0x224] sm:$0xf0] }
 0x2b8   :  { %2164 = vmatpush.bf16.msra.mxu1 %v3131_v46  ;;  %2178 = vmatpush.bf16.msra.mxu3 %v3355_v61  ;;  %v3634_v46 = vld [vmem:[%s5407_s11 + $0x1cc] sm:$0xf]  ;;  %v3631_v61 = vld [vmem:[%s5407_s11 + $0x1b0] sm:$0xf0] }
 0x2b9   :  { %2140 = vmatpush.bf16.msra.mxu0 %v3015_v19  ;;  %2154 = vmatpush.bf16.msra.mxu2 %v3239_v38  ;;  %v3215_v49 = vor.u32 %v3634_v46, %v3212_v47  ;;  %v3191_v3 = vor.u32 %v3631_v61, %v3190_v58  ;;  %v3415_v19 = vor.u32 %v3687_v44, %v3414_v48  ;;  %v3360_v38 = vld [vmem:[%s5407_s11 + $0x304] sm:$0xf0]  ;;  %v3593_v58 = vld [vmem:[%s5407_s11 + $0x84] sm:$0xf]  ;;  %v3652_v44 = vld [vmem:[%s5407_s11 + $0x258] sm:$0xf0] }
 0x2ba   :  { %v3363_v47 = vor.u32 %v3670_v36, %v3360_v38  ;;  %v3220_v36 = vld [vmem:[%s5407_s11 + $0x1ec] sm:$0xf0]  ;;  %v3422_v38 = vld [vmem:[%s5407_s11 + $0x360] sm:$0xf] }
 0x2bc   :  { %2165 = vmatpush.bf16.msra.mxu1 %v3103_v53  ;;  %2179 = vmatpush.bf16.msra.mxu3 %v3327_v54  ;;  %v3164_v54 = vld [vmem:[%s5407_s11 + $0x17c] sm:$0xf0] }
 0x2bd   :  { %2141 = vmatpush.bf16.msra.mxu0 %v2987_v31  ;;  %2155 = vmatpush.bf16.msra.mxu2 %v3211_v45  ;;  %v3167_v12 = vor.u32 %v3621_v4, %v3164_v54  ;;  %v3108_v31 = vld [vmem:[%s5407_s11 + $0x10c] sm:$0xf0]  ;;  %v3080_v45 = vld [vmem:[%s5407_s11 + $0xd4] sm:$0xf0]  ;;  %v3586_v4 = vld [vmem:[%s5407_s11 + $0x4c] sm:$0xf] }
 0x2be   :  { %v3111_v40 = vor.u32 %v3607_v30, %v3108_v31  ;;  %v3024_v54 = vld [vmem:[%s5407_s11 + $0x64] sm:$0xf0]  ;;  %v3251_v30 = vor.u32 %v3642_v24, %v3248_v25 }
 0x2bf   :  { %v3170_v31 = vld [vmem:[%s5407_s11 + $0x168] sm:$0xf] }
 0x2c0   :  { %2166 = vmatpush.bf16.msra.mxu1 %v3075_v5  ;;  %2180 = vmatpush.bf16.msra.mxu3 %v3299_v16  ;;  %v3195_v5 = vor.u32 %v3628_v62, %v3192_v0  ;;  %v3302_v0 = vld [vmem:[%s5407_s11 + $0x278] sm:$0xf] }
 0x2c4   :  { %2167 = vmatpush.bf16.msra.mxu1 %v3047_v60  ;;  %2181 = vmatpush.bf16.msra.mxu3 %v3271_v28  ;;  %v3416_v60 = vld [vmem:[%s5407_s11 + $0x374] sm:$0xf0]  ;;  %v3106_v28 = vld [vmem:[%s5407_s11 + $0xf0] sm:$0xf] }
 0x2c5   :  { %v3419_v20 = vor.u32 %v3684_v10, %v3416_v60  ;;  %v3107_v39 = vor.u32 %v3610_v29, %v3106_v28  ;;  %v3649_v10 = vld [vmem:[%s5407_s11 + $0x244] sm:$0xf]  ;;  %v3276_v60 = vld [vmem:[%s5407_s11 + $0x25c] sm:$0xf0]  ;;  %v3247_v29 = vor.u32 %v3645_v23, %v3246_v21 }
 0x2c6   :  { %v3279_v18 = vor.u32 %v3649_v10, %v3276_v60  ;;  %v3002_v10 = vld [vmem:[%s5407_s11 + $0x18] sm:$0xf]  ;;  %v3583_v60 = vld [vmem:[%s5407_s11 + $0x30] sm:$0xf0]  ;;  %v5382_v21 = vld [vmem:[%s5408_s12] sm:$0x7f] }
 0x2c7   :  { %v1488_v23 = vperm.slane %v5382_v21, 0  ;;  %v1489_v24 = vperm.slane %v5382_v21, 1 }
 0x2c8   :  { %2168 = vmatpush.bf16.msra.mxu1 %v3019_v22  ;;  %2182 = vmatpush.bf16.msra.mxu3 %v3243_v41  ;;  %v3078_v41 = vld [vmem:[%s5407_s11 + $0xb8] sm:$0xf] }
 0x2cc   :  { %2169 = vmatpush.bf16.msra.mxu1 %v2991_v34  ;;  %2183 = vmatpush.bf16.msra.mxu3 %v3215_v49  ;;  %v3358_v34 = vld [vmem:[%s5407_s11 + $0x2e8] sm:$0xf]  ;;  %v3330_v49 = vld [vmem:[%s5407_s11 + $0x2b0] sm:$0xf] }
 0x2cd   :  { %v3359_v46 = vor.u32 %v3673_v35, %v3358_v34  ;;  %v3331_v61 = vor.u32 %v3666_v50, %v3330_v49  ;;  %v3638_v34 = vld [vmem:[%s5407_s11 + $0x1e8] sm:$0xf0]  ;;  %v3635_v35 = vld [vmem:[%s5407_s11 + $0x1d4] sm:$0xf]  ;;  %v3681_v49 = vld [vmem:[%s5407_s11 + $0x340] sm:$0xf0] }
 0x32c   :  { %v1333_v51 = vpop.f32.mrf.mxu1 }
 0x32d   :  { %v1334_v55 = vadd.f32 %v1333_v51, %v1240_v52  ;;  %v3663_v51 = vld [vmem:[%s5407_s11 + $0x2b4] sm:$0xf] }
 0x32f   :  { %v1352_v1 = vmax.f32 %v1334_v55, 0.0  ;;  %v3083_v55 = vor.u32 %v3600_v43, %v3080_v45  ;;  %v3142_v43 = vld [vmem:[%s5407_s11 + $0x130] sm:$0xf]  ;;  %v3618_v45 = vld [vmem:[%s5407_s11 + $0x148] sm:$0xf0] }
 0x330   :  { %v3143_v50 = vor.u32 %v3618_v45, %v3142_v43  ;;  %v1490_v43 = vperm.slane %v5382_v21, 2  ;;  %v1491_v45 = vperm.slane %v5382_v21, 3 }
 0x332   :  { %v1347_v53 = vpop.f32.mrf.mxu3 }
 0x333   :  { %v1348_v7 = vadd.f32 %v1347_v53, %v1241_v56  ;;  %v3079_v53 = vor.u32 %v3603_v42, %v3078_v41  ;;  %v3223_v42 = vor.u32 %v3635_v35, %v3220_v36 }
 0x334   :  { %v1335_v57 = vpop.f32.mrf.mxu1 }
 0x335   :  { %v1336_v59 = vadd.f32 %v1335_v57, %v1240_v52  ;;  %v1353_v15 = vmax.f32 %v1348_v7, 0.0  ;;  %v3332_v52 = vld [vmem:[%s5407_s11 + $0x2cc] sm:$0xf0]  ;;  %v3596_v57 = vld [vmem:[%s5407_s11 + $0x98] sm:$0xf0] }
 0x336   :  { %v3335_v62 = vor.u32 %v3663_v51, %v3332_v52  ;;  %v3022_v7 = vld [vmem:[%s5407_s11 + $0x48] sm:$0xf]  ;;  %v3114_v51 = vld [vmem:[%s5407_s11 + $0xf8] sm:$0xf]  ;;  %v3611_v52 = vld [vmem:[%s5407_s11 + $0x110] sm:$0xf0] }
 0x337   :  { %v1354_v2 = vmax.f32 %v1336_v59, 0.0  ;;  %v3052_v59 = vld [vmem:[%s5407_s11 + $0x9c] sm:$0xf0] }
 0x338   :  { %v3055_v6 = vor.u32 %v3593_v58, %v3052_v59  ;;  %v3086_v58 = vld [vmem:[%s5407_s11 + $0xc0] sm:$0xf]  ;;  %v3604_v59 = vld [vmem:[%s5407_s11 + $0xd8] sm:$0xf0] }
 0x339   :  { %v5088_v8 = vpack.c.bf16 %v1354_v2, %v1352_v1  ;;  %v3659_v1 = vld [vmem:[%s5407_s11 + $0x290] sm:$0xf0]  ;;  %v3656_v2 = vld [vmem:[%s5407_s11 + $0x27c] sm:$0xf] }
 0x33a   :  { %v1349_v63 = vpop.f32.mrf.mxu3 }
 0x33b   :  { %v1350_v37 = vadd.f32 %v1349_v63, %v1241_v56  ;;  %2086 = vmatmul.bf16.vlgmr.msrb.gmra.mxu0 %v5088_v8  ;;  %2114 = vmatmul.bf16.vlgmr.msrb.gmra.mxu1 %v5088_v8  ;;  %v3050_v56 = vld [vmem:[%s5407_s11 + $0x80] sm:$0xf]  ;;  %v3303_v63 = vor.u32 %v3659_v1, %v3302_v0  ;;  %v3667_v0 = vld [vmem:[%s5407_s11 + $0x2d0] sm:$0xf0]  ;;  %v3087_v1 = vor.u32 %v3604_v59, %v3086_v58 }
 0x33c   :  { %2190 = vmatpush.bf16.msrb.mxu0 %v3191_v3  ;;  %2218 = vmatpush.bf16.msrb.mxu1 %v3195_v5  ;;  %v3304_v3 = vld [vmem:[%s5407_s11 + $0x294] sm:$0xf0]  ;;  %v3051_v5 = vor.u32 %v3596_v57, %v3050_v56  ;;  %v3674_v56 = vld [vmem:[%s5407_s11 + $0x308] sm:$0xf0]  ;;  %v3115_v57 = vor.u32 %v3611_v52, %v3114_v51 }
 0x33d   :  { %v1355_v16 = vmax.f32 %v1350_v37, 0.0  ;;  %v3307_v48 = vor.u32 %v3656_v2, %v3304_v3  ;;  %v3274_v37 = vld [vmem:[%s5407_s11 + $0x240] sm:$0xf]  ;;  %v3058_v2 = vld [vmem:[%s5407_s11 + $0x88] sm:$0xf] }
 0x33e   :  { %v3275_v17 = vor.u32 %v3652_v44, %v3274_v37  ;;  %v3597_v3 = vld [vmem:[%s5407_s11 + $0xa0] sm:$0xf0] }
 0x33f   :  { %v5128_v22 = vpack.c.bf16 %v1355_v16, %v1353_v15  ;;  %v3579_v15 = vld [vmem:[%s5407_s11 + $0x14] sm:$0xf]  ;;  %v2996_v16 = vld [vmem:[%s5407_s11 + $0x2c] sm:$0xf0]  ;;  %v3653_v37 = vld [vmem:[%s5407_s11 + $0x260] sm:$0xf0] }
 0x340   :  { %2191 = vmatpush.bf16.msrb.mxu0 %v3163_v11  ;;  %2219 = vmatpush.bf16.msrb.mxu1 %v3167_v12  ;;  %v3023_v11 = vor.u32 %v3589_v9, %v3022_v7  ;;  %v3027_v12 = vor.u32 %v3586_v4, %v3024_v54  ;;  %v3660_v7 = vld [vmem:[%s5407_s11 + $0x298] sm:$0xf0]  ;;  %v3059_v9 = vor.u32 %v3597_v3, %v3058_v2  ;;  %v3030_v4 = vld [vmem:[%s5407_s11 + $0x50] sm:$0xf]  ;;  %v3590_v54 = vld [vmem:[%s5407_s11 + $0x68] sm:$0xf0] }
 0x341   :  { %2100 = vmatmul.bf16.vlgmr.msrb.gmra.mxu2 %v5128_v22  ;;  %2128 = vmatmul.bf16.vlgmr.msrb.gmra.mxu3 %v5128_v22  ;;  %v3031_v44 = vor.u32 %v3590_v54, %v3030_v4 }
 0x342   :  { %2204 = vmatpush.bf16.msrb.mxu2 %v3415_v19  ;;  %2232 = vmatpush.bf16.msrb.mxu3 %v3419_v20  ;;  %v3198_v19 = vld [vmem:[%s5407_s11 + $0x1a0] sm:$0xf]  ;;  %v3632_v20 = vld [vmem:[%s5407_s11 + $0x1b8] sm:$0xf0] }
 0x343   :  { %v3199_v28 = vor.u32 %v3632_v20, %v3198_v19 }
 0x344   :  { %2192 = vmatpush.bf16.msrb.mxu0 %v3135_v26  ;;  %2220 = vmatpush.bf16.msrb.mxu1 %v3139_v27  ;;  %v2995_v26 = vor.u32 %v3582_v14, %v2994_v13  ;;  %v2999_v27 = vor.u32 %v3579_v15, %v2996_v16  ;;  %v3646_v13 = vld [vmem:[%s5407_s11 + $0x228] sm:$0xf0]  ;;  %v3003_v14 = vor.u32 %v3583_v60, %v3002_v10  ;;  %v3226_v16 = vld [vmem:[%s5407_s11 + $0x1d8] sm:$0xf] }
 0x346   :  { %2205 = vmatpush.bf16.msrb.mxu2 %v3387_v32  ;;  %2233 = vmatpush.bf16.msrb.mxu3 %v3391_v33  ;;  %v3625_v32 = vld [vmem:[%s5407_s11 + $0x180] sm:$0xf0]  ;;  %v3218_v33 = vld [vmem:[%s5407_s11 + $0x1d0] sm:$0xf] }
 0x347   :  { %v3219_v41 = vor.u32 %v3638_v34, %v3218_v33 }
 0x348   :  { %2193 = vmatpush.bf16.msrb.mxu0 %v3107_v39  ;;  %2221 = vmatpush.bf16.msrb.mxu1 %v3111_v40  ;;  %v3688_v39 = vld [vmem:[%s5407_s11 + $0x378] sm:$0xf0]  ;;  %v3171_v40 = vor.u32 %v3625_v32, %v3170_v31 }
 0x34a   :  { %2206 = vmatpush.bf16.msrb.mxu2 %v3359_v46  ;;  %2234 = vmatpush.bf16.msrb.mxu3 %v3363_v47  ;;  %v3423_v46 = vor.u32 %v3688_v39, %v3422_v38  ;;  %v3394_v47 = vld [vmem:[%s5407_s11 + $0x328] sm:$0xf] }
 0x34b   :  { %2142 = vmatmul.bf16.vlgmr.msra.gmra.mxu0 %v5088_v8  ;;  %2170 = vmatmul.bf16.vlgmr.msra.gmra.mxu1 %v5088_v8 }
 0x34c   :  { %2194 = vmatpush.bf16.msrb.mxu0 %v3079_v53  ;;  %2222 = vmatpush.bf16.msrb.mxu1 %v3083_v55  ;;  %v3395_v53 = vor.u32 %v3681_v49, %v3394_v47  ;;  %v3366_v55 = vld [vmem:[%s5407_s11 + $0x2f0] sm:$0xf] }
 0x34e   :  { %2207 = vmatpush.bf16.msrb.mxu2 %v3331_v61  ;;  %2235 = vmatpush.bf16.msrb.mxu3 %v3335_v62  ;;  %v3367_v61 = vor.u32 %v3674_v56, %v3366_v55  ;;  %v3338_v62 = vld [vmem:[%s5407_s11 + $0x2b8] sm:$0xf] }
 0x350   :  { %2195 = vmatpush.bf16.msrb.mxu0 %v3051_v5  ;;  %2223 = vmatpush.bf16.msrb.mxu1 %v3055_v6  ;;  %v3339_v5 = vor.u32 %v3667_v0, %v3338_v62  ;;  %v3310_v6 = vld [vmem:[%s5407_s11 + $0x280] sm:$0xf] }
 0x351   :  { %2156 = vmatmul.bf16.vlgmr.msra.gmra.mxu2 %v5128_v22  ;;  %2184 = vmatmul.bf16.vlgmr.msra.gmra.mxu3 %v5128_v22 }
 0x352   :  { %2208 = vmatpush.bf16.msrb.mxu2 %v3303_v63  ;;  %2236 = vmatpush.bf16.msrb.mxu3 %v3307_v48  ;;  %v3311_v63 = vor.u32 %v3660_v7, %v3310_v6  ;;  %v3282_v48 = vld [vmem:[%s5407_s11 + $0x248] sm:$0xf] }
 0x354   :  { %2196 = vmatpush.bf16.msrb.mxu0 %v3023_v11  ;;  %2224 = vmatpush.bf16.msrb.mxu1 %v3027_v12  ;;  %v3283_v11 = vor.u32 %v3653_v37, %v3282_v48  ;;  %v3254_v12 = vld [vmem:[%s5407_s11 + $0x210] sm:$0xf] }
 0x355   :  { %v3255_v15 = vor.u32 %v3646_v13, %v3254_v12  ;;  %v1492_v12 = vperm.slane %v5382_v21, 4 }
 0x356   :  { %2209 = vmatpush.bf16.msrb.mxu2 %v3275_v17  ;;  %2237 = vmatpush.bf16.msrb.mxu3 %v3279_v18  ;;  %v3639_v17 = vld [vmem:[%s5407_s11 + $0x1f0] sm:$0xf0]  ;;  %s3749_s11 = smov [#allocation2]  }
 0x357   :  { %v3227_v18 = vor.u32 %v3639_v17, %v3226_v16  ;;  %s2348_s12 = sshll.u32 %s3749_s11, 4  ;;  %s2349_s12 = int_to_ptr.vmem [resolvable:$true] %s2348_s12 }
 0x358   :  { %2197 = vmatpush.bf16.msrb.mxu0 %v2995_v26  ;;  %2225 = vmatpush.bf16.msrb.mxu1 %v2999_v27 }
 0x35a   :  { %2210 = vmatpush.bf16.msrb.mxu2 %v3247_v29  ;;  %2238 = vmatpush.bf16.msrb.mxu3 %v3251_v30 }
 0x35b   :  { %2198 = vmatmul.bf16.vlgmr.msrb.gmra.mxu0 %v5088_v8  ;;  %2226 = vmatmul.bf16.vlgmr.msrb.gmra.mxu1 %v5088_v8 }
 0x35c   :  { %2246 = vmatpush.bf16.msra.mxu0 %v3199_v28 }
 0x35e   :  { %2211 = vmatpush.bf16.msrb.mxu2 %v3219_v41  ;;  %2239 = vmatpush.bf16.msrb.mxu3 %v3223_v42 }
 0x360   :  { %2247 = vmatpush.bf16.msra.mxu0 %v3171_v40 }
 0x361   :  { %2212 = vmatmul.bf16.vlgmr.msrb.gmra.mxu2 %v5128_v22  ;;  %2240 = vmatmul.bf16.vlgmr.msrb.gmra.mxu3 %v5128_v22 }
 0x362   :  { %2260 = vmatpush.bf16.msra.mxu2 %v3423_v46 }
 0x364   :  { %2248 = vmatpush.bf16.msra.mxu0 %v3143_v50 }
 0x366   :  { %2261 = vmatpush.bf16.msra.mxu2 %v3395_v53 }
 0x368   :  { %2249 = vmatpush.bf16.msra.mxu0 %v3115_v57 }
 0x36a   :  { %2262 = vmatpush.bf16.msra.mxu2 %v3367_v61 }
 0x36c   :  { %2250 = vmatpush.bf16.msra.mxu0 %v3087_v1 }
 0x36e   :  { %2263 = vmatpush.bf16.msra.mxu2 %v3339_v5 }
 0x370   :  { %2251 = vmatpush.bf16.msra.mxu0 %v3059_v9 }
 0x372   :  { %2264 = vmatpush.bf16.msra.mxu2 %v3311_v63 }
 0x374   :  { %2252 = vmatpush.bf16.msra.mxu0 %v3031_v44 }
 0x376   :  { %2265 = vmatpush.bf16.msra.mxu2 %v3283_v11 }
 0x378   :  { %2253 = vmatpush.bf16.msra.mxu0 %v3003_v14 }
 0x37a   :  { %2266 = vmatpush.bf16.msra.mxu2 %v3255_v15 }
 0x37b   :  { %2254 = vmatmul.bf16.vlgmr.msra.gmra.mxu0 %v5088_v8 }
 0x37e   :  { %2267 = vmatpush.bf16.msra.mxu2 %v3227_v18  ;;  %v1493_v18 = vperm.slane %v5382_v21, 5 }
 0x381   :  { %2268 = vmatmul.bf16.vlgmr.msra.gmra.mxu2 %v5128_v22 }
 0x3b8   :  { %v2087_v19 = vpop.f32.mrf.mxu0  ;;  %v2115_v20 = vpop.f32.mrf.mxu1 }
 0x3b9   :  { %v2088_v27 = vadd.f32 %v2087_v19, %v1488_v23  ;;  %v2116_v28 = vadd.f32 %v2115_v20, %v1489_v24 }
 0x3c0   :  { %v2089_v25 = vpop.f32.mrf.mxu0  ;;  %v2117_v26 = vpop.f32.mrf.mxu1 }
 0x3c1   :  { %v2090_v34 = vadd.f32 %v2089_v25, %v1488_v23  ;;  %v2118_v35 = vadd.f32 %v2117_v26, %v1489_v24 }
 0x3c4   :  { %v2101_v29 = vpop.f32.mrf.mxu2  ;;  %v2129_v8 = vpop.f32.mrf.mxu3 }
 0x3c5   :  { %v2102_v30 = vadd.f32 %v2101_v29, %v2088_v27  ;;  %v2130_v31 = vadd.f32 %v2129_v8, %v2116_v28 }
 0x3c7   :  { %v2274_v22 = vmul.f32 0.5, %v2102_v30  ;;  %v2275_v32 = vmul.f32 0.5, %v2130_v31 }
 0x3c8   :  { %v2143_v33 = vpop.f32.mrf.mxu0  ;;  %v2171_v36 = vpop.f32.mrf.mxu1 }
 0x3c9   :  { %3695 = vtanh.f32 %v2274_v22  ;;  %v2144_v55 = vadd.f32 %v2143_v33, %v1490_v43  ;;  %v2172_v56 = vadd.f32 %v2171_v36, %v1491_v45 }
 0x3ca   :  { %3697 = vtanh.f32 %v2275_v32 }
 0x3cc   :  { %v2103_v38 = vpop.f32.mrf.mxu2  ;;  %v2131_v39 = vpop.f32.mrf.mxu3 }
 0x3cd   :  { %v2104_v40 = vadd.f32 %v2103_v38, %v2090_v34  ;;  %v2132_v41 = vadd.f32 %v2131_v39, %v2118_v35 }
 0x3cf   :  { %v3696_v42 = vpop.eup %3695  ;;  %v2281_v46 = vmul.f32 0.5, %v2104_v40  ;;  %v2282_v47 = vmul.f32 0.5, %v2132_v41 }
 0x3d0   :  { %v3698_v49 = vpop.eup %3697  ;;  %v2302_v50 = vadd.f32 1.0, %v3696_v42  ;;  %v2145_v57 = vpop.f32.mrf.mxu0 }
 0x3d1   :  { %v2303_v51 = vadd.f32 1.0, %v3698_v49  ;;  %3699 = vtanh.f32 %v2281_v46  ;;  %v2173_v61 = vpop.f32.mrf.mxu1  ;;  %v2146_v54 = vadd.f32 %v2145_v57, %v1490_v43 }
 0x3d2   :  { %v2316_v52 = vmul.f32 0.5, %v2302_v50  ;;  %3701 = vtanh.f32 %v2282_v47  ;;  %v2174_v63 = vadd.f32 %v2173_v61, %v1491_v45 }
 0x3d3   :  { %v2317_v53 = vmul.f32 0.5, %v2303_v51 }
 0x3d4   :  { %2330 = vst [vmem:[#allocation2] sm:$0xff] %v2316_v52  ;;  %v2157_v58 = vpop.f32.mrf.mxu2  ;;  %v2185_v59 = vpop.f32.mrf.mxu3 }
 0x3d5   :  { %2331 = vst [vmem:[#allocation2 + $0x8] sm:$0xff] %v2317_v53  ;;  %v2158_v62 = vadd.f32 %v2157_v58, %v2144_v55  ;;  %v2186_v0 = vadd.f32 %v2185_v59, %v2172_v56 }
 0x3d7   :  { %v3700_v1 = vpop.eup %3699  ;;  %v2276_v2 = vmul.f32 0.5, %v2158_v62  ;;  %v2277_v3 = vmul.f32 0.5, %v2186_v0 }
 0x3d8   :  { %v3702_v5 = vpop.eup %3701  ;;  %v2309_v6 = vadd.f32 1.0, %v3700_v1  ;;  %v2199_v60 = vpop.f32.mrf.mxu0  ;;  %v1494_v1 = vperm.slane %v5382_v21, 6 }
 0x3d9   :  { %v2310_v7 = vadd.f32 1.0, %v3702_v5  ;;  %3703 = vtanh.f32 %v2276_v2  ;;  %v2227_v13 = vpop.f32.mrf.mxu1  ;;  %v2200_v24 = vadd.f32 %v2199_v60, %v1492_v12 }
 0x3da   :  { %v2323_v9 = vmul.f32 0.5, %v2309_v6  ;;  %3705 = vtanh.f32 %v2277_v3  ;;  %v2228_v25 = vadd.f32 %v2227_v13, %v1493_v18 }
 0x3db   :  { %v2324_v4 = vmul.f32 0.5, %v2310_v7 }
 0x3dc   :  { %2337 = vst [vmem:[#allocation2 + $0x38] sm:$0xff] %v2323_v9  ;;  %v2159_v48 = vpop.f32.mrf.mxu2  ;;  %v2187_v37 = vpop.f32.mrf.mxu3 }
 0x3dd   :  { %2338 = vst [vmem:[#allocation2 + $0x40] sm:$0xff] %v2324_v4  ;;  %v2160_v44 = vadd.f32 %v2159_v48, %v2146_v54  ;;  %v2188_v10 = vadd.f32 %v2187_v37, %v2174_v63 }
 0x3df   :  { %v3704_v11 = vpop.eup %3703  ;;  %v2283_v14 = vmul.f32 0.5, %v2160_v44  ;;  %v2284_v15 = vmul.f32 0.5, %v2188_v10 }
 0x3e0   :  { %v3706_v16 = vpop.eup %3705  ;;  %v2304_v17 = vadd.f32 1.0, %v3704_v11  ;;  %v2201_v32 = vpop.f32.mrf.mxu0 }
 0x3e1   :  { %v2305_v19 = vadd.f32 1.0, %v3706_v16  ;;  %3707 = vtanh.f32 %v2283_v14  ;;  %v2229_v35 = vpop.f32.mrf.mxu1  ;;  %v2202_v39 = vadd.f32 %v2201_v32, %v1492_v12 }
 0x3e2   :  { %v2318_v20 = vmul.f32 0.5, %v2304_v17  ;;  %3709 = vtanh.f32 %v2284_v15  ;;  %v2230_v40 = vadd.f32 %v2229_v35, %v1493_v18 }
 0x3e3   :  { %v2319_v23 = vmul.f32 0.5, %v2305_v19 }
 0x3e4   :  { %2332 = vst [vmem:[#allocation2 + $0x10] sm:$0xff] %v2318_v20  ;;  %v2213_v26 = vpop.f32.mrf.mxu2  ;;  %v2241_v28 = vpop.f32.mrf.mxu3 }
 0x3e5   :  { %2333 = vst [vmem:[#allocation2 + $0x18] sm:$0xff] %v2319_v23  ;;  %v2214_v27 = vadd.f32 %v2213_v26, %v2200_v24  ;;  %v2242_v29 = vadd.f32 %v2241_v28, %v2228_v25 }
 0x3e7   :  { %v3708_v8 = vpop.eup %3707  ;;  %v2278_v30 = vmul.f32 0.5, %v2214_v27  ;;  %v2279_v33 = vmul.f32 0.5, %v2242_v29 }
 0x3e8   :  { %v3710_v31 = vpop.eup %3709  ;;  %v2311_v22 = vadd.f32 1.0, %v3708_v8 }
 0x3e9   :  { %v2312_v34 = vadd.f32 1.0, %v3710_v31  ;;  %3711 = vtanh.f32 %v2278_v30 }
 0x3ea   :  { %v2325_v36 = vmul.f32 0.5, %v2311_v22  ;;  %3713 = vtanh.f32 %v2279_v33 }
 0x3eb   :  { %v2326_v38 = vmul.f32 0.5, %v2312_v34 }
 0x3ec   :  { %2339 = vst [vmem:[#allocation2 + $0x48] sm:$0xff] %v2325_v36  ;;  %v2215_v41 = vpop.f32.mrf.mxu2  ;;  %v2243_v43 = vpop.f32.mrf.mxu3 }
 0x3ed   :  { %2340 = vst [vmem:[#allocation2 + $0x50] sm:$0xff] %v2326_v38  ;;  %v2216_v42 = vadd.f32 %v2215_v41, %v2202_v39  ;;  %v2244_v45 = vadd.f32 %v2243_v43, %v2230_v40 }
 0x3ef   :  { %v3712_v46 = vpop.eup %3711  ;;  %v2285_v47 = vmul.f32 0.5, %v2216_v42  ;;  %v2286_v51 = vmul.f32 0.5, %v2244_v45 }
 0x3f0   :  { %v3714_v49 = vpop.eup %3713  ;;  %v2306_v50 = vadd.f32 1.0, %v3712_v46 }
 0x3f1   :  { %v2307_v52 = vadd.f32 1.0, %v3714_v49  ;;  %3715 = vtanh.f32 %v2285_v47 }
 0x3f2   :  { %v2320_v53 = vmul.f32 0.5, %v2306_v50  ;;  %3717 = vtanh.f32 %v2286_v51 }
 0x3f3   :  { %v2321_v55 = vmul.f32 0.5, %v2307_v52 }
 0x3f4   :  { %2334 = vst [vmem:[#allocation2 + $0x20] sm:$0xff] %v2320_v53 }
 0x3f5   :  { %2335 = vst [vmem:[#allocation2 + $0x28] sm:$0xff] %v2321_v55 }
 0x3f7   :  { %v3716_v56 = vpop.eup %3715 }
 0x3f8   :  { %v3718_v57 = vpop.eup %3717  ;;  %v2313_v58 = vadd.f32 1.0, %v3716_v56  ;;  %v2255_v0 = vpop.f32.mrf.mxu0 }
 0x3f9   :  { %v2314_v59 = vadd.f32 1.0, %v3718_v57  ;;  %v2256_v2 = vadd.f32 %v2255_v0, %v1494_v1 }
 0x3fa   :  { %v2327_v61 = vmul.f32 0.5, %v2313_v58 }
 0x3fb   :  { %v2328_v62 = vmul.f32 0.5, %v2314_v59 }
 0x3fc   :  { %2341 = vst [vmem:[#allocation2 + $0x58] sm:$0xff] %v2327_v61 }
 0x3fd   :  { %2342 = vst [vmem:[#allocation2 + $0x60] sm:$0xff] %v2328_v62 }
 0x400   :  { %v2257_v7 = vpop.f32.mrf.mxu0 }
 0x401   :  { %v2258_v9 = vadd.f32 %v2257_v7, %v1494_v1 }
 0x404   :  { %v2269_v3 = vpop.f32.mrf.mxu2 }
 0x405   :  { %v2270_v5 = vadd.f32 %v2269_v3, %v2256_v2 }
 0x407   :  { %v2280_v6 = vmul.f32 0.5, %v2270_v5 }
 0x409   :  { %3719 = vtanh.f32 %v2280_v6 }
 0x40c   :  { %v2271_v4 = vpop.f32.mrf.mxu2 }
 0x40d   :  { %v2272_v54 = vadd.f32 %v2271_v4, %v2258_v9 }
 0x40f   :  { %v3720_v63 = vpop.eup %3719  ;;  %v2287_v48 = vmul.f32 0.5, %v2272_v54 }
 0x410   :  { %v2308_v37 = vadd.f32 1.0, %v3720_v63 }
 0x411   :  { %3721 = vtanh.f32 %v2287_v48 }
 0x412   :  { %v2322_v44 = vmul.f32 0.5, %v2308_v37 }
 0x414   :  { %2336 = vst.msk [vmem:[#allocation2 + $0x30] sm:$0xff] %vm683_vm0, %v2322_v44 }
 0x417   :  { %v3722_v21 = vpop.eup %3721 }
 0x418   :  { %v2315_v10 = vadd.f32 1.0, %v3722_v21 }
 0x41a   :  { %v2329_v60 = vmul.f32 0.5, %v2315_v10 }
 0x41c   :  { %2343 = vst.msk [vmem:[#allocation2 + $0x68] sm:$0xff] %vm683_vm0, %v2329_v60 }
 0x41d   :  { %2356 = dma.vmem_to_hbm [thread:$0]  %s2349_s12, 1792, %s2351_s3, [#allocation3], %s3750_s26, %s3750_s26, %s3751_s27  }
 0x41e   :  { %3747 = dma.done.wait [#allocation3], 1792  }
 0x41f   :  { %3748 = vsyncadd [#allocation3], 4294965504 }
 0x420   :  { %2361 = vsyncpa [#allocation3], 1 }

</bundles_post_ra>
